<compile_context>
chip_gen: v6e
topology: v6e:2x2x1
jax: 0.10.0
libtpu: 0.0.40
codegen_flags: <defaults>
</compile_context>

<pallas_src>
import jax
import jax.numpy as jnp
from jax import lax
from jax.experimental import pallas as pl
from jax.experimental.pallas import tpu as pltpu


def _round_up(x, m):
    return ((x + m - 1) // m) * m


def _relation_update_kernel(x_ref, rhs_ref, w_ref, out_ref):
    """One batch tile of relation updates.

    x_ref   : (TB, 2*Dp)   f32          [e_s | e_o] rows, lane-padded
    rhs_ref : (2*Dp, 2*Dp) f32 or bf16  [[V1 | W1], [V2 | W2]]  (VMEM-resident)
    w_ref   : (1, Dp)      f32          cross-term weight vector (zero-padded)
    out_ref : (TB, Dp)     f32          normalized updated subject embeddings
    """
    dp = out_ref.shape[-1]
    x = x_ref[...]                                             # (TB, 2Dp) f32

    # Single fused MXU matmul for all four projections; f32 accumulation.
    fused = jnp.dot(x.astype(rhs_ref.dtype), rhs_ref[...],
                    preferred_element_type=jnp.float32)        # (TB, 2Dp)
    g_pre = fused[:, :dp]                                      # e_s@V1 + e_o@V2
    pre = fused[:, dp:]                                        # e_s@W1 + e_o@W2

    es = x[:, :dp]                                             # f32 views
    eo = x[:, dp:]

    # cross = e_s * <e_o, w>   (one XLU lane-reduce per tile, f32)
    eo_dot_w = jnp.sum(eo * w_ref[...], axis=-1, keepdims=True)   # (TB, 1)

    g = jax.nn.sigmoid(g_pre)
    e_tilde = jnp.maximum(pre + es * eo_dot_w, 0.0)
    e_upd = es + e_tilde * g

    # F.normalize(p=2): x / max(||x||, 1e-12)  ==  x * rsqrt(max(||x||^2, 1e-24))
    ss = jnp.sum(e_upd * e_upd, axis=-1, keepdims=True)
    out_ref[...] = e_upd * lax.rsqrt(jnp.maximum(ss, 1e-24))


def relation_update(e_s, e_o, V1, V2, W1, W2, w, *, tb=256, use_bf16=True):
    """Batched RRN relation update.

    e_s, e_o : (B, D) (or (D,) for the original single-pair call) float.
    Returns updated, L2-normalized subject embeddings, same shape as e_s.
    """
    single = (e_s.ndim == 1)
    if single:
        e_s = e_s[None, :]
        e_o = e_o[None, :]
    B, D = e_s.shape

    Dp = _round_up(D, 128)                                # lane-dense last dim
    tb = _round_up(max(8, min(tb, _round_up(B, 8))), 8)   # sublane-aligned tile
    Bp = _round_up(B, tb)
    pad_b, pad_d = Bp - B, Dp - D

    f32 = jnp.float32
    es_p = jnp.pad(e_s.astype(f32), ((0, pad_b), (0, pad_d)))
    eo_p = jnp.pad(e_o.astype(f32), ((0, pad_b), (0, pad_d)))
    x = jnp.concatenate([es_p, eo_p], axis=1)             # (Bp, 2*Dp)

    def _padm(m):
        return jnp.pad(m.astype(f32), ((0, pad_d), (0, pad_d)))

    # Fused weight block [[V1 | W1], [V2 | W2]], built once on the host side.
    rhs = jnp.concatenate(
        [jnp.concatenate([_padm(V1), _padm(W1)], axis=1),
         jnp.concatenate([_padm(V2), _padm(W2)], axis=1)], axis=0)  # (2Dp, 2Dp)
    rhs_dtype = jnp.bfloat16 if use_bf16 else jnp.float32
    rhs = rhs.astype(rhs_dtype)

    w_p = jnp.pad(w.astype(f32), (0, pad_d)).reshape(1, Dp)

    grid = (Bp // tb,)
    in_specs = [
        pl.BlockSpec((tb, 2 * Dp), lambda i: (i, 0)),          # activations
        pl.BlockSpec((2 * Dp, 2 * Dp), lambda i: (0, 0)),      # resident weights
        pl.BlockSpec((1, Dp), lambda i: (0, 0)),               # resident w
    ]
    out_spec = pl.BlockSpec((tb, Dp), lambda i: (i, 0))

    # VMEM budget derived from actual buffers (resident weights + double-buffered
    # activation/output tiles), clamped well under the 64 MiB/TC limit of v7x.
    itemsize = jnp.dtype(rhs_dtype).itemsize
    rhs_bytes = (2 * Dp) * (2 * Dp) * itemsize
    x_tile_bytes = tb * 2 * Dp * 4
    out_tile_bytes = tb * Dp * 4
    w_bytes = 8 * Dp * 4
    vmem_bytes = 2 * (rhs_bytes + w_bytes + 2 * x_tile_bytes + 2 * out_tile_bytes)
    vmem_bytes = int(min(max(vmem_bytes, 4 << 20), 48 << 20))

    cost = pl.CostEstimate(
        flops=2 * Bp * (2 * Dp) * (2 * Dp) + 12 * Bp * Dp,
        transcendentals=Bp * Dp + Bp,
        bytes_accessed=(x.size * 4 + rhs.size * itemsize
                        + w_p.size * 4 + Bp * Dp * 4),
    )

    out = pl.pallas_call(
        _relation_update_kernel,
        out_shape=jax.ShapeDtypeStruct((Bp, Dp), jnp.float32),
        grid=grid,
        in_specs=in_specs,
        out_specs=out_spec,
        compiler_params=pltpu.CompilerParams(
            dimension_semantics=("parallel",),
            vmem_limit_bytes=vmem_bytes,
        ),
        cost_estimate=cost,
    )(x, rhs, w_p)

    out = out[:B, :D]
    if single:
        out = out[0]
    return out


def _reference(es, eo, V1, V2, W1, W2, w):
    """Pure-JAX batched reference matching the PyTorch forward."""
    g = jax.nn.sigmoid(es @ V1 + eo @ V2)
    cross = es * (eo @ w)[:, None]               # sum_j e_s[i]*e_o[j]*w[j]
    e_tilde = jax.nn.relu(es @ W1 + eo @ W2 + cross)
    e_upd = es + e_tilde * g
    nrm = jnp.sqrt(jnp.sum(e_upd * e_upd, axis=-1, keepdims=True))
    return e_upd / jnp.maximum(nrm, 1e-12)


if __name__ == "__main__":
    B, D = 512, 32   # many relation pairs, embedding_dim = 32
    key = jax.random.PRNGKey(0)
    ks = jax.random.split(key, 7)

    e_s = jax.random.normal(ks[0], (B, D), dtype=jnp.float32)
    e_o = jax.random.normal(ks[1], (B, D), dtype=jnp.float32)
    V1 = jax.random.normal(ks[2], (D, D), dtype=jnp.float32)
    V2 = jax.random.normal(ks[3], (D, D), dtype=jnp.float32)
    W1 = jax.random.normal(ks[4], (D, D), dtype=jnp.float32)
    W2 = jax.random.normal(ks[5], (D, D), dtype=jnp.float32)
    w = jax.random.normal(ks[6], (D,), dtype=jnp.float32)

    ref = _reference(e_s, e_o, V1, V2, W1, W2, w)

    # f32 weights: tight check against the reference.
    out_f32 = relation_update(e_s, e_o, V1, V2, W1, W2, w, tb=256, use_bf16=False)
    jax.block_until_ready(out_f32)
    assert out_f32.shape == (B, D)
    assert jnp.allclose(out_f32, ref, atol=5e-5, rtol=5e-5), "f32 path mismatch"

    # bf16 matmul path (default, fast): relaxed tolerance.
    out_bf16 = relation_update(e_s, e_o, V1, V2, W1, W2, w, tb=256, use_bf16=True)
    jax.block_until_ready(out_bf16)
    assert float(jnp.max(jnp.abs(out_bf16 - ref))) < 0.1, "bf16 path diverged"

    # Original single-pair call signature still works.
    out_one = relation_update(e_s[0], e_o[0], V1, V2, W1, W2, w, use_bf16=False)
    jax.block_until_ready(out_one)
    assert jnp.allclose(out_one, ref[0], atol=5e-5, rtol=5e-5), "single-pair mismatch"

    print("KERNEL_OK")
</pallas_src>

<mosaic_0001>
module attributes {stable_mosaic.version = 11 : i64} {
  func.func @_relation_update_kernel(%arg0: i32, %arg1: memref<256x256xf32, #tpu.memory_space<vmem>>, %arg2: memref<256x256xf32, #tpu.memory_space<vmem>>, %arg3: memref<1x128xf32, #tpu.memory_space<vmem>>, %arg4: memref<256x128xf32, #tpu.memory_space<vmem>>) attributes {dimension_semantics = [#tpu.dimension_semantics<parallel>], iteration_bounds = array<i64: 2>, scalar_prefetch = 0 : i64, scratch_operands = 0 : i64, tpu.core_type = #tpu.core_type<tc>, window_params = [{transform_indices = @transform_0, window_bounds = array<i64: 256, 256>}, {pipeline_mode = #tpu.pipeline_mode<synchronous>, transform_indices = @transform_1, window_bounds = array<i64: 256, 256>}, {pipeline_mode = #tpu.pipeline_mode<synchronous>, transform_indices = @transform_2, window_bounds = array<i64: 1, 128>}, {transform_indices = @transform_3, window_bounds = array<i64: 256, 128>}]} {
    %c0 = arith.constant 0 : index
    %c0_0 = arith.constant 0 : index
    %0 = vector.load %arg1[%c0, %c0_0] : memref<256x256xf32, #tpu.memory_space<vmem>>, vector<256x256xf32>
    %c0_1 = arith.constant 0 : index
    %c0_2 = arith.constant 0 : index
    %1 = vector.load %arg2[%c0_1, %c0_2] : memref<256x256xf32, #tpu.memory_space<vmem>>, vector<256x256xf32>
    %cst = arith.constant dense<0.000000e+00> : vector<256x256xf32>
    %2 = tpu.matmul %0, %1, %cst {dimension_numbers = #tpu.dot_dimension_numbers<[1], [0], [0], [1], [0, 0, 1, 1], [], []>} : vector<256x256xf32>, vector<256x256xf32>, vector<256x256xf32> -> vector<256x256xf32>
    %3 = vector.extract_strided_slice %2 {offsets = [0, 0], sizes = [256, 128], strides = [1, 1]} : vector<256x256xf32> to vector<256x128xf32>
    %4 = vector.extract_strided_slice %2 {offsets = [0, 128], sizes = [256, 128], strides = [1, 1]} : vector<256x256xf32> to vector<256x128xf32>
    %5 = vector.extract_strided_slice %0 {offsets = [0, 0], sizes = [256, 128], strides = [1, 1]} : vector<256x256xf32> to vector<256x128xf32>
    %6 = vector.extract_strided_slice %0 {offsets = [0, 128], sizes = [256, 128], strides = [1, 1]} : vector<256x256xf32> to vector<256x128xf32>
    %c0_3 = arith.constant 0 : index
    %c0_4 = arith.constant 0 : index
    %7 = vector.load %arg3[%c0_3, %c0_4] : memref<1x128xf32, #tpu.memory_space<vmem>>, vector<1x128xf32>
    %8 = vector.broadcast %7 : vector<1x128xf32> to vector<256x128xf32>
    %9 = arith.mulf %6, %8 : vector<256x128xf32>
    %cst_5 = arith.constant dense<0.000000e+00> : vector<256xf32>
    %10 = vector.multi_reduction <add>, %9, %cst_5 [1] : vector<256x128xf32> to vector<256xf32>
    %11 = vector.shape_cast %10 : vector<256xf32> to vector<256x1xf32>
    %12 = arith.negf %3 : vector<256x128xf32>
    %13 = math.exp %12 : vector<256x128xf32>
    %cst_6 = arith.constant 1.000000e+00 : f32
    %14 = vector.broadcast %cst_6 : f32 to vector<256x128xf32>
    %15 = arith.addf %14, %13 : vector<256x128xf32>
    %16 = arith.divf %14, %15 : vector<256x128xf32>
    %17 = vector.broadcast %11 : vector<256x1xf32> to vector<256x128xf32>
    %18 = arith.mulf %5, %17 : vector<256x128xf32>
    %19 = arith.addf %4, %18 : vector<256x128xf32>
    %cst_7 = arith.constant 0.000000e+00 : f32
    %20 = vector.broadcast %cst_7 : f32 to vector<256x128xf32>
    %21 = arith.maximumf %19, %20 : vector<256x128xf32>
    %22 = arith.mulf %21, %16 : vector<256x128xf32>
    %23 = arith.addf %5, %22 : vector<256x128xf32>
    %24 = arith.mulf %23, %23 : vector<256x128xf32>
    %cst_8 = arith.constant dense<0.000000e+00> : vector<256xf32>
    %25 = vector.multi_reduction <add>, %24, %cst_8 [1] : vector<256x128xf32> to vector<256xf32>
    %26 = vector.shape_cast %25 : vector<256xf32> to vector<256x1xf32>
    %cst_9 = arith.constant 1.000000e-24 : f32
    %27 = vector.broadcast %cst_9 : f32 to vector<256x1xf32>
    %28 = arith.maximumf %26, %27 : vector<256x1xf32>
    %29 = math.rsqrt %28 : vector<256x1xf32>
    %30 = vector.broadcast %29 : vector<256x1xf32> to vector<256x128xf32>
    %31 = arith.mulf %23, %30 : vector<256x128xf32>
    %c0_10 = arith.constant 0 : index
    %c0_11 = arith.constant 0 : index
    %32 = vector.load %arg4[%c0_10, %c0_11] : memref<256x128xf32, #tpu.memory_space<vmem>>, vector<256x128xf32>
    tpu.vector_store %arg4[%c0_10, %c0_11], %31 {strides = array<i32>} : memref<256x128xf32, #tpu.memory_space<vmem>>, vector<256x128xf32>,
    return
  }
  func.func @transform_0(%arg0: i32) -> (i32, i32) {
    %c0_i32 = arith.constant 0 : i32
    %c0_i32_0 = arith.constant 0 : i32
    return %arg0, %c0_i32 : i32, i32
  }
  func.func @transform_1(%arg0: i32) -> (i32, i32) {
    %c0_i32 = arith.constant 0 : i32
    %c0_i32_0 = arith.constant 0 : i32
    %c0_i32_1 = arith.constant 0 : i32
    return %c0_i32, %c0_i32_0 : i32, i32
  }
  func.func @transform_2(%arg0: i32) -> (i32, i32) {
    %c0_i32 = arith.constant 0 : i32
    %c0_i32_0 = arith.constant 0 : i32
    %c0_i32_1 = arith.constant 0 : i32
    return %c0_i32, %c0_i32_0 : i32, i32
  }
  func.func @transform_3(%arg0: i32) -> (i32, i32) {
    %c0_i32 = arith.constant 0 : i32
    %c0_i32_0 = arith.constant 0 : i32
    return %arg0, %c0_i32 : i32, i32
  }
}

</mosaic_0001>

<bundles_post_ra>
// kernel: tpu_custom_call.1
= control target key start
LH: loop header
LB: loop body
LE: loop exit
PB: predicated region body
PF: predicated region fallthrough
CT: control target
= control target key end

     0   :  { %8 = vsyncpa [#allocation3], 0  ;;  %s2819_s0 = inlined_call_operand.hbm [shape: f32[512,256], index: 0, kind: input, shape index: {}]   ;;  %s2820_s1 = inlined_call_operand.hbm [shape: f32[256,256], index: 1, kind: input, shape index: {}]   ;;  %s2821_s2 = inlined_call_operand.vmem [shape: f32[1,128], index: 2, kind: input, shape index: {}]   ;;  %s2822_s3 = inlined_call_operand.hbm [shape: f32[512,128], index: 3, kind: output, shape index: {}]  }
   0x1   :  { %10 = vsyncpa [#allocation3 + $0x1], 0 }
   0x2   :  { %11 = vsyncpa [#allocation6], 0 }
   0x3   :  { %12 = vsyncpa [#allocation4], 0 }
   0x4   :  { %14 = vsyncpa [#allocation4 + $0x1], 0  ;;  %s1894_s12 = smov 0   ;;  %s1896_s13 = smov 0  }
   0x5   :  { %s1898_s14 = smov 0   ;;  %s1900_s15 = smov 0  }
   0x6 LB: > { %s1915_s16 = sadd.s32 4294967295, %s1865_s15   ;;  %s1368_s17 = sadd.s32 4294967294, %s1865_s15   ;;  %s1865_s15 = sphi %s1900_s15, %s2924_s15   ;;  %s1861_s14 = sphi %s1898_s14, %s2923_s14   ;;  %s1857_s13 = sphi %s1896_s13, %s2922_s13   ;;  %s1853_s12 = sphi %s1894_s12, %s2921_s12  }
   0x7   : > { %p40_p0 = scmp.ne.s32.totalorder %s1857_s13, %s1853_s12  ;;  %p2823_p1 = scmp.eq.s32.totalorder %s1915_s16, 0 }
   0x8   : > { %p112_p3 = scmp.eq.s32.totalorder %s1368_s17, 1  ;;  %p1369_p5 = scmp.ge.s32.totalorder %s1865_s15, 1 }
   0x9   : > { %p1924_p4 = por %p2823_p1, %p40_p0  ;;  %p119_p7 = scmp.lt.s32.totalorder %s1865_s15, 3 }
   0xa   : > { %p1929_p6 = por %p112_p3, %p40_p0  ;;  %s1867_s21 = smov [#allocation5]  }
   0xb   : > { %s2849_s18 = scalar_select %p1924_p4, 1, 0 }
   0xc   : > { %s2850_s19 = scalar_select %p1929_p6, 1, 0 }
   0xd   : > { %p1934_p8 = pnand %p1369_p5, %p119_p7  ;;  %s131_s22 = sshll.u32 %s1867_s21, 4  ;;  %s132_s22 = int_to_ptr.vmem [resolvable:$true] %s131_s22 }
   0xe   : > { %s1948_s24 = sadd.s32 1, %s1865_s15   ;;  %s27_s25 = sadd.s32 1, %s1861_s14 }
   0xf   : > { %s2851_s20 = scalar_select %p1934_p8, 1, 0 }
  0x10   : > { %p1493_p9 = pneg %p1934_p8  ;;  %s24_s26 = ssub.s32 %s1865_s15, %s1948_s24 }
  0x11   : > { %s1754_s27 = scalar_lea.vmem %s132_s22, 8192  ;;  %p1762_p5 = scmp.lt.s32.totalorder %s132_s22, %s132_s22 }
  0x12   : > { %p1943_p11 = pnand %p1493_p9, %p2823_p1  ;;  %p1755_p13 = scmp.ne.s32.totalorder %s132_s22, %s1754_s27 }
  0x13   : > { %p1763_p7 = scmp.lt.s32.totalorder %s1754_s27, %s1754_s27 }
  0x14   : > { %p1745_p12 = pneg %p1943_p11 }
  0x15   : > { %p1764_p10 = por %p1763_p7, %p1762_p5 }
  0x16   : > { %p1757_p0 = pnand %p1755_p13, %p1745_p12 }
  0x18   : > { %p1758_p3 = pneg %p1757_p0 }
  0x1a   : > { %p1765_p2 = pnand %p1764_p10, %p1758_p3 }
  0x1c   : > { %1768 = shalt.err (!%p1765_p2)
}
  0x1d   : > { %s1868_s28 = smov 256   ;;  %s1869_s29 = smov 16  }
  0x1e   : > { %1496 = dma.hbm_to_vmem [thread:$0]  (!%p1943_p11), %s2820_s1, 8192, %s132_s22, [#allocation6], %s1868_s28, %s1868_s28, %s1869_s29  }
  0x1f   : > { %p25_p2 = scmp.eq.s32.totalorder %s24_s26, 0  ;;  %p34_p9 = scmp.ne.s32.totalorder %s1861_s14, %s1857_s13 }
  0x20   : > { %p35_p10 = scmp.eq.s32.totalorder %s1865_s15, 0  ;;  %p1506_p12 = scmp.lt.s32.totalorder %s1865_s15, 2 }
  0x21   : > { %s1968_s5 = scalar_select %p25_p2, %s1861_s14, %s27_s25  }
  0x22   : > { %p36_p13 = por %p35_p10, %p34_p9  ;;  %p2853_p0 = scmp.eq.s32.totalorder %s1915_s16, 1 }
  0x23   : > { %s148_s7 = sand.u32 1, %s1861_s14   ;;  %s1419_s8 = sshll.u32 %s1865_s15, 13 }
  0x24   : > { %p1972_p3 = por %p2853_p0, %p34_p9  ;;  %s1372_s9 = sshll.u32 %s148_s7, 9 }
  0x25   : > { %s1981_s17 = scalar_lea.hbm %s2819_s0, %s1419_s8  ;;  %s152_s21 = scalar_lea.vmem [#allocation2], %s1372_s9 }
  0x26   : > { %s2854_s6 = scalar_select %p1972_p3, 1, 0 }
  0x27   : > { %s160_s22 = sshll.u32 %s152_s21, 4  ;;  %p1983_p11 = pnand %p1506_p12, %p36_p13  ;;  %s1987_s22 = int_to_ptr.vmem [resolvable:$true] %s160_s22 }
  0x28   : > { %s1989_s25 = scalar_lea.sflag [#allocation3], %s148_s7  ;;  %s1769_s26 = scalar_lea.hbm %s1981_s17, 8192 }
  0x29   : > { %p1770_p5 = scmp.ne.s32.totalorder %s1981_s17, %s1769_s26  ;;  %p1771_p7 = pneg %p1983_p11 }
  0x2a   : > { %s1774_s4 = scalar_lea.hbm %s2819_s0, 16384  ;;  %p1775_p10 = scmp.lt.s32.totalorder %s1981_s17, %s2819_s0 }
  0x2b   : > { %p1772_p2 = pnand %p1771_p7, %p1770_p5  ;;  %p1776_p12 = scmp.lt.s32.totalorder %s1774_s4, %s1769_s26 }
  0x2d   : > { %p1773_p9 = pneg %p1772_p2  ;;  %p1777_p13 = por %p1776_p12, %p1775_p10 }
  0x2f   : > { %p1778_p0 = pnand %p1777_p13, %p1773_p9 }
  0x31   : > { %1781 = shalt.err (!%p1778_p0)
}
  0x32   : > { %s1782_s7 = scalar_lea.vmem %s1987_s22, 8192  ;;  %s1870_s10 = smov [#allocation2]  }
  0x33   : > { %p1783_p1 = scmp.ne.s32.totalorder %s1987_s22, %s1782_s7  ;;  %s1787_s11 = sshll.u32 %s1870_s10, 4  ;;  %s1788_s11 = int_to_ptr.vmem [resolvable:$false] %s1787_s11 }
  0x34   : > { %s1789_s21 = scalar_lea.vmem %s1788_s11, 16384  ;;  %p1790_p2 = scmp.lt.s32.totalorder %s1987_s22, %s1788_s11 }
  0x35   : > { %p1785_p6 = pnand %p1783_p1, %p1771_p7  ;;  %p1791_p3 = scmp.lt.s32.totalorder %s1789_s21, %s1782_s7 }
  0x37   : > { %p1786_p5 = pneg %p1785_p6  ;;  %p1792_p4 = por %p1791_p3, %p1790_p2 }
  0x39   : > { %p1793_p8 = pnand %p1792_p4, %p1786_p5 }
  0x3b   : > { %1796 = shalt.err (!%p1793_p8)
}
  0x3c   : > { %1500 = dma.hbm_to_vmem [thread:$0]  (!%p1983_p11), %s1981_s17, 8192, %s1987_s22, %s1989_s25, %s1868_s28, %s1868_s28, %s1869_s29  }
  0x3d   : > { %p2856_p1 = scmp.ne.s32.totalorder %s2851_s20, 0 }
  0x3f   : > { %172 = sbr.rel (%p2856_p1) target bundleno = 612 (0x264), region = 32 }
  0x44   : > { %s2016_s26 = sand.u32 1, %s1857_s13   ;;  %p2857_p4 = scmp.ne.s32.totalorder %s2849_s18, 0 }
  0x45   : > { %s1377_s27 = sshll.u32 %s2016_s26, 9  ;;  %s175_s30 = scalar_lea.sflag [#allocation3], %s2016_s26 }
  0x46   : > { %s2020_s4 = scalar_lea.vmem [#allocation2], %s1377_s27 }
  0x47   : > { %1840 = dma.done.wait (%p2857_p4), %s175_s30, 8192  }
  0x48   : > { %1842 = vsyncadd (%p2857_p4), %s175_s30, 4294959104  ;;  %p2858_p6 = scmp.eq.s32.totalorder %s1915_s16, 0 }
  0x4a   : > { %1844 = dma.done.wait (%p2858_p6), [#allocation6], 8192   ;;  %p2859_p8 = pmov %p2858_p6 }
  0x4b   : > { %v302_v0 = vld [vmem:[#allocation5 + $0xf8] sm:$0xff]  ;;  %v301_v1 = vld [vmem:[#allocation5 + $0xf0] sm:$0xff]  ;;  %v300_v2 = vld [vmem:[#allocation5 + $0xe8] sm:$0xff]  ;;  %s1379_s28 = sshll.u32 %s2016_s26, 8  ;;  %s1420_s17 = sshll.u32 %s1915_s16, 12 }
  0x4c   : > { %1846 = vsyncadd (%p2859_p8), [#allocation6], 4294959104  ;;  %335 = vmatprep.subr.mxu0 %v302_v0  ;;  %1421 = vmatprep.subr.mxu1 %v302_v0  ;;  %v299_v3 = vld [vmem:[#allocation5 + $0xe0] sm:$0xff]  ;;  %v298_v4 = vld [vmem:[#allocation5 + $0xd8] sm:$0xff]  ;;  %s2704_s29 = scalar_lea.vmem [#allocation7], %s1379_s28  ;;  %s2772_s8 = scalar_lea.hbm %s2822_s3, %s1420_s17 }
  0x4d   : > { %336 = vmatpush1.msra.mxu0 %v301_v1  ;;  %1453 = vmatpush1.msra.mxu1 %v301_v1  ;;  %v297_v5 = vld [vmem:[#allocation5 + $0xd0] sm:$0xff]  ;;  %v296_v6 = vld [vmem:[#allocation5 + $0xc8] sm:$0xff]  ;;  %v295_v7 = vld [vmem:[#allocation5 + $0xc0] sm:$0xff]  ;;  %s1285_s22 = sshll.u32 %s2704_s29, 4  ;;  %s1272_s16 = scalar_lea.sflag [#allocation4], %s2016_s26  ;;  %s2774_s22 = int_to_ptr.vmem [resolvable:$true] %s1285_s22 }
  0x4e   : > { %337 = vmatprep.subr.mxu0 %v300_v2  ;;  %1422 = vmatprep.subr.mxu1 %v300_v2  ;;  %v294_v8 = vld [vmem:[#allocation5 + $0xb8] sm:$0xff]  ;;  %v293_v9 = vld [vmem:[#allocation5 + $0xb0] sm:$0xff]  ;;  %v292_v10 = vld [vmem:[#allocation5 + $0xa8] sm:$0xff]  ;;  %s1797_s9 = scalar_lea.vmem %s2774_s22, 4096  ;;  %p2918_p11 = scmp.ne.s32.totalorder %s2854_s6, 0 }
  0x4f   : > { %338 = vmatpush1.msra.mxu0 %v299_v3  ;;  %1454 = vmatpush1.msra.mxu1 %v299_v3  ;;  %v291_v11 = vld [vmem:[#allocation5 + $0xa0] sm:$0xff]  ;;  %v290_v12 = vld [vmem:[#allocation5 + $0x98] sm:$0xff]  ;;  %v289_v13 = vld [vmem:[#allocation5 + $0x90] sm:$0xff]  ;;  %p1798_p3 = scmp.ne.s32.totalorder %s2774_s22, %s1797_s9  ;;  %s1871_s7 = smov [#allocation7]  }
  0x50   : > { %339 = vmatprep.subr.mxu0 %v298_v4  ;;  %1423 = vmatprep.subr.mxu1 %v298_v4  ;;  %v288_v14 = vld [vmem:[#allocation5 + $0x88] sm:$0xff]  ;;  %v287_v15 = vld [vmem:[#allocation5 + $0x80] sm:$0xff]  ;;  %v286_v16 = vld [vmem:[#allocation5 + $0x78] sm:$0xff]  ;;  %s1801_s10 = sshll.u32 %s1871_s7, 4  ;;  %s1802_s10 = int_to_ptr.vmem [resolvable:$false] %s1801_s10 }
  0x51   : > { %340 = vmatpush1.msra.mxu0 %v297_v5  ;;  %1455 = vmatpush1.msra.mxu1 %v297_v5  ;;  %v285_v17 = vld [vmem:[#allocation5 + $0x70] sm:$0xff]  ;;  %v284_v18 = vld [vmem:[#allocation5 + $0x68] sm:$0xff]  ;;  %v283_v19 = vld [vmem:[#allocation5 + $0x60] sm:$0xff]  ;;  %p1799_p7 = pnand %p1798_p3, %p2918_p11  ;;  %s1803_s11 = scalar_lea.vmem %s1802_s10, 8192 }
  0x52   : > { %341 = vmatprep.subr.mxu0 %v296_v6  ;;  %1424 = vmatprep.subr.mxu1 %v296_v6  ;;  %v282_v20 = vld [vmem:[#allocation5 + $0x58] sm:$0xff]  ;;  %v281_v21 = vld [vmem:[#allocation5 + $0x50] sm:$0xff]  ;;  %v280_v22 = vld [vmem:[#allocation5 + $0x48] sm:$0xff]  ;;  %p1804_p10 = scmp.lt.s32.totalorder %s2774_s22, %s1802_s10  ;;  %p1805_p12 = scmp.lt.s32.totalorder %s1803_s11, %s1797_s9 }
  0x53   : > { %342 = vmatpush1.msra.mxu0 %v295_v7  ;;  %1456 = vmatpush1.msra.mxu1 %v295_v7  ;;  %v279_v23 = vld [vmem:[#allocation5 + $0x40] sm:$0xff]  ;;  %v278_v24 = vld [vmem:[#allocation5 + $0x38] sm:$0xff]  ;;  %v277_v25 = vld [vmem:[#allocation5 + $0x30] sm:$0xff]  ;;  %p1800_p9 = pneg %p1799_p7 }
  0x54   : > { %343 = vmatprep.subr.mxu0 %v294_v8  ;;  %1425 = vmatprep.subr.mxu1 %v294_v8  ;;  %v276_v26 = vld [vmem:[#allocation5 + $0x28] sm:$0xff]  ;;  %v275_v27 = vld [vmem:[#allocation5 + $0x20] sm:$0xff]  ;;  %v274_v28 = vld [vmem:[#allocation5 + $0x18] sm:$0xff]  ;;  %p1806_p13 = por %p1805_p12, %p1804_p10 }
  0x55   : > { %344 = vmatpush1.msra.mxu0 %v293_v9  ;;  %1457 = vmatpush1.msra.mxu1 %v293_v9  ;;  %v273_v29 = vld [vmem:[#allocation5 + $0x10] sm:$0xff]  ;;  %v272_v30 = vld [vmem:[#allocation5 + $0x8] sm:$0xff]  ;;  %v271_v31 = vld [vmem:[#allocation5] sm:$0xff] }
  0x56   : > { %345 = vmatprep.subr.mxu0 %v292_v10  ;;  %1426 = vmatprep.subr.mxu1 %v292_v10  ;;  %v334_v32 = vld [vmem:[#allocation5 + $0x1f8] sm:$0xff]  ;;  %v333_v33 = vld [vmem:[#allocation5 + $0x1f0] sm:$0xff]  ;;  %v332_v34 = vld [vmem:[#allocation5 + $0x1e8] sm:$0xff]  ;;  %p1807_p0 = pnand %p1806_p13, %p1800_p9 }
  0x57   : > { %346 = vmatpush1.msra.mxu0 %v291_v11  ;;  %1458 = vmatpush1.msra.mxu1 %v291_v11  ;;  %v331_v35 = vld [vmem:[#allocation5 + $0x1e0] sm:$0xff]  ;;  %v330_v36 = vld [vmem:[#allocation5 + $0x1d8] sm:$0xff]  ;;  %v329_v37 = vld [vmem:[#allocation5 + $0x1d0] sm:$0xff] }
  0x58   : > { %347 = vmatprep.subr.mxu0 %v290_v12  ;;  %1427 = vmatprep.subr.mxu1 %v290_v12  ;;  %v328_v38 = vld [vmem:[#allocation5 + $0x1c8] sm:$0xff]  ;;  %v327_v39 = vld [vmem:[#allocation5 + $0x1c0] sm:$0xff]  ;;  %v326_v40 = vld [vmem:[#allocation5 + $0x1b8] sm:$0xff] }
  0x59   : > { %348 = vmatpush1.msra.mxu0 %v289_v13  ;;  %1459 = vmatpush1.msra.mxu1 %v289_v13  ;;  %v325_v41 = vld [vmem:[#allocation5 + $0x1b0] sm:$0xff]  ;;  %v324_v42 = vld [vmem:[#allocation5 + $0x1a8] sm:$0xff]  ;;  %v323_v43 = vld [vmem:[#allocation5 + $0x1a0] sm:$0xff] }
  0x5a   : > { %349 = vmatprep.subr.mxu0 %v288_v14  ;;  %1428 = vmatprep.subr.mxu1 %v288_v14  ;;  %v322_v44 = vld [vmem:[#allocation5 + $0x198] sm:$0xff]  ;;  %v321_v45 = vld [vmem:[#allocation5 + $0x190] sm:$0xff]  ;;  %v320_v46 = vld [vmem:[#allocation5 + $0x188] sm:$0xff] }
  0x5b   : > { %350 = vmatpush1.msra.mxu0 %v287_v15  ;;  %1460 = vmatpush1.msra.mxu1 %v287_v15  ;;  %v319_v47 = vld [vmem:[#allocation5 + $0x180] sm:$0xff]  ;;  %v318_v48 = vld [vmem:[#allocation5 + $0x178] sm:$0xff]  ;;  %v317_v49 = vld [vmem:[#allocation5 + $0x170] sm:$0xff] }
  0x5c   : > { %351 = vmatprep.subr.mxu0 %v286_v16  ;;  %1429 = vmatprep.subr.mxu1 %v286_v16  ;;  %v316_v50 = vld [vmem:[#allocation5 + $0x168] sm:$0xff]  ;;  %v315_v51 = vld [vmem:[#allocation5 + $0x160] sm:$0xff]  ;;  %v314_v52 = vld [vmem:[#allocation5 + $0x158] sm:$0xff] }
  0x5d   : > { %352 = vmatpush1.msra.mxu0 %v285_v17  ;;  %1461 = vmatpush1.msra.mxu1 %v285_v17  ;;  %v313_v53 = vld [vmem:[#allocation5 + $0x150] sm:$0xff]  ;;  %v312_v54 = vld [vmem:[#allocation5 + $0x148] sm:$0xff]  ;;  %v311_v55 = vld [vmem:[#allocation5 + $0x140] sm:$0xff] }
  0x5e   : > { %353 = vmatprep.subr.mxu0 %v284_v18  ;;  %1430 = vmatprep.subr.mxu1 %v284_v18  ;;  %v310_v56 = vld [vmem:[#allocation5 + $0x138] sm:$0xff]  ;;  %v309_v57 = vld [vmem:[#allocation5 + $0x130] sm:$0xff]  ;;  %v308_v58 = vld [vmem:[#allocation5 + $0x128] sm:$0xff] }
  0x5f   : > { %354 = vmatpush1.msra.mxu0 %v283_v19  ;;  %1462 = vmatpush1.msra.mxu1 %v283_v19  ;;  %v307_v59 = vld [vmem:[#allocation5 + $0x120] sm:$0xff]  ;;  %v306_v60 = vld [vmem:[#allocation5 + $0x118] sm:$0xff]  ;;  %v305_v61 = vld [vmem:[#allocation5 + $0x110] sm:$0xff] }
  0x60   : > { %355 = vmatprep.subr.mxu0 %v282_v20  ;;  %1431 = vmatprep.subr.mxu1 %v282_v20  ;;  %v304_v62 = vld [vmem:[#allocation5 + $0x108] sm:$0xff]  ;;  %v303_v63 = vld [vmem:[#allocation5 + $0x100] sm:$0xff]  ;;  %v210_v6 = vld [vmem:[%s2020_s4 + $0x18] sm:$0xff] }
  0x61   : > { %356 = vmatpush1.msra.mxu0 %v281_v21  ;;  %1463 = vmatpush1.msra.mxu1 %v281_v21  ;;  %v2033_v0 = vld [vmem:[%s2821_s2] ss:$0 sm:$0xff]  ;;  %v208_v1 = vld [vmem:[%s2020_s4 + $0x8] sm:$0xff]  ;;  %v2048_v7 = vld [vmem:[%s2020_s4 + $0x118] sm:$0xff] }
  0x62   : > { %357 = vmatprep.subr.mxu0 %v280_v22  ;;  %1432 = vmatprep.subr.mxu1 %v280_v22  ;;  %v2037_v2 = vld [vmem:[%s2020_s4 + $0x108] sm:$0xff]  ;;  %v2040_v3 = vld [vmem:[%s2020_s4] sm:$0xff]  ;;  %v599_v8 = vmul.f32 %v2033_v0, %v208_v1  ;;  %v2057_v10 = vld [vmem:[%s2020_s4 + $0x10] sm:$0xff]  ;;  %v600_v14 = vmul.f32 %v2033_v0, %v210_v6 }
  0x63   : > { %358 = vmatpush1.msra.mxu0 %v279_v23  ;;  %1464 = vmatpush1.msra.mxu1 %v279_v23  ;;  %v2043_v4 = vld [vmem:[%s2020_s4 + $0x100] sm:$0xff]  ;;  %v212_v5 = vld [vmem:[%s2020_s4 + $0x28] sm:$0xff]  ;;  %v2060_v11 = vld [vmem:[%s2020_s4 + $0x110] sm:$0xff] }
  0x64   : > { %359 = vmatprep.subr.mxu0 %v278_v24  ;;  %1433 = vmatprep.subr.mxu1 %v278_v24  ;;  %v601_v9 = vmul.f32 %v2033_v0, %v212_v5  ;;  %v214_v12 = vld [vmem:[%s2020_s4 + $0x38] sm:$0xff]  ;;  %v2064_v13 = vld [vmem:[%s2020_s4 + $0x128] sm:$0xff]  ;;  %v2071_v16 = vld [vmem:[%s2020_s4 + $0x20] sm:$0xff] }
  0x65   : > { %360 = vmatpush1.msra.mxu0 %v277_v25  ;;  %1465 = vmatpush1.msra.mxu1 %v277_v25  ;;  %v602_v15 = vmul.f32 %v2033_v0, %v214_v12  ;;  %2860 = vst [vmem:[#allocation11_spill] sm:$0xff] %v2071_v16  ;;  %v2075_v17 = vld [vmem:[%s2020_s4 + $0x120] sm:$0xff]  ;;  %v216_v18 = vld [vmem:[%s2020_s4 + $0x48] sm:$0xff]  ;;  %v218_v19 = vld [vmem:[%s2020_s4 + $0x58] sm:$0xff] }
  0x66   : > { %361 = vmatprep.subr.mxu0 %v276_v26  ;;  %1434 = vmatprep.subr.mxu1 %v276_v26  ;;  %v2080_v20 = vld [vmem:[%s2020_s4 + $0x138] sm:$0xff]  ;;  %v603_v21 = vmul.f32 %v2033_v0, %v216_v18  ;;  %v604_v22 = vmul.f32 %v2033_v0, %v218_v19  ;;  %v2087_v23 = vld [vmem:[%s2020_s4 + $0x30] sm:$0xff]  ;;  %v220_v25 = vld [vmem:[%s2020_s4 + $0x68] sm:$0xff] }
  0x67   : > { %362 = vmatpush1.msra.mxu0 %v275_v27  ;;  %1466 = vmatpush1.msra.mxu1 %v275_v27  ;;  %v2091_v24 = vld [vmem:[%s2020_s4 + $0x130] sm:$0xff]  ;;  %v222_v26 = vld [vmem:[%s2020_s4 + $0x78] sm:$0xff]  ;;  %v2096_v27 = vld [vmem:[%s2020_s4 + $0x148] sm:$0xff] }
  0x68   : > { %363 = vmatprep.subr.mxu0 %v274_v28  ;;  %1435 = vmatprep.subr.mxu1 %v274_v28  ;;  %v605_v28 = vmul.f32 %v2033_v0, %v220_v25 }
  0x69   : > { %364 = vmatpush1.msra.mxu0 %v273_v29  ;;  %1467 = vmatpush1.msra.mxu1 %v273_v29  ;;  %v606_v29 = vmul.f32 %v2033_v0, %v222_v26 }
  0x6a   : > { %365 = vmatprep.subr.mxu0 %v272_v30  ;;  %1436 = vmatprep.subr.mxu1 %v272_v30  ;;  %v2103_v30 = vld [vmem:[%s2020_s4 + $0x40] sm:$0xff] }
  0x6b   : > { %366 = vmatpush1.msra.mxu0 %v271_v31  ;;  %1468 = vmatpush1.msra.mxu1 %v271_v31  ;;  %v2107_v31 = vld [vmem:[%s2020_s4 + $0x140] sm:$0xff] }
  0x6c   : > { %367 = vmatprep.subr.mxu0 %v334_v32  ;;  %1437 = vmatprep.subr.mxu1 %v334_v32  ;;  %v224_v32 = vld [vmem:[%s2020_s4 + $0x88] sm:$0xff] }
  0x6d   : > { %368 = vmatpush2.msra.mxu0 %v333_v33  ;;  %1469 = vmatpush2.msra.mxu1 %v333_v33  ;;  %v226_v33 = vld [vmem:[%s2020_s4 + $0x98] sm:$0xff] }
  0x6e   : > { %369 = vmatprep.subr.mxu0 %v332_v34  ;;  %1438 = vmatprep.subr.mxu1 %v332_v34  ;;  %v2112_v34 = vld [vmem:[%s2020_s4 + $0x158] sm:$0xff] }
  0x6f   : > { %370 = vmatpush2.msra.mxu0 %v331_v35  ;;  %1470 = vmatpush2.msra.mxu1 %v331_v35  ;;  %v607_v35 = vmul.f32 %v2033_v0, %v224_v32 }
  0x70   : > { %371 = vmatprep.subr.mxu0 %v330_v36  ;;  %1439 = vmatprep.subr.mxu1 %v330_v36  ;;  %v608_v36 = vmul.f32 %v2033_v0, %v226_v33 }
  0x71   : > { %372 = vmatpush2.msra.mxu0 %v329_v37  ;;  %1471 = vmatpush2.msra.mxu1 %v329_v37  ;;  %v2119_v37 = vld [vmem:[%s2020_s4 + $0x50] sm:$0xff] }
  0x72   : > { %373 = vmatprep.subr.mxu0 %v328_v38  ;;  %1440 = vmatprep.subr.mxu1 %v328_v38  ;;  %v2123_v38 = vld [vmem:[%s2020_s4 + $0x150] sm:$0xff] }
  0x73   : > { %374 = vmatpush2.msra.mxu0 %v327_v39  ;;  %1472 = vmatpush2.msra.mxu1 %v327_v39  ;;  %v228_v39 = vld [vmem:[%s2020_s4 + $0xa8] sm:$0xff] }
  0x74   : > { %375 = vmatprep.subr.mxu0 %v326_v40  ;;  %1441 = vmatprep.subr.mxu1 %v326_v40  ;;  %v2127_v40 = vld [vmem:[%s2020_s4 + $0xb8] sm:$0xff] }
  0x75   : > { %376 = vmatpush2.msra.mxu0 %v325_v41  ;;  %1473 = vmatpush2.msra.mxu1 %v325_v41  ;;  %v2130_v41 = vld [vmem:[%s2020_s4 + $0x168] sm:$0xff] }
  0x76   : > { %377 = vmatprep.subr.mxu0 %v324_v42  ;;  %1442 = vmatprep.subr.mxu1 %v324_v42  ;;  %v609_v42 = vmul.f32 %v2033_v0, %v228_v39 }
  0x77   : > { %378 = vmatpush2.msra.mxu0 %v323_v43  ;;  %1474 = vmatpush2.msra.mxu1 %v323_v43  ;;  %v610_v43 = vmul.f32 %v2033_v0, %v2127_v40 }
  0x78   : > { %379 = vmatprep.subr.mxu0 %v322_v44  ;;  %1443 = vmatprep.subr.mxu1 %v322_v44  ;;  %v2136_v44 = vld [vmem:[%s2020_s4 + $0xc8] sm:$0xff] }
  0x79   : > { %380 = vmatpush2.msra.mxu0 %v321_v45  ;;  %1475 = vmatpush2.msra.mxu1 %v321_v45  ;;  %v2139_v45 = vld [vmem:[%s2020_s4 + $0xd8] sm:$0xff] }
  0x7a   : > { %381 = vmatprep.subr.mxu0 %v320_v46  ;;  %1444 = vmatprep.subr.mxu1 %v320_v46  ;;  %v2145_v46 = vld [vmem:[%s2020_s4 + $0x60] sm:$0xff] }
  0x7b   : > { %382 = vmatpush2.msra.mxu0 %v319_v47  ;;  %1476 = vmatpush2.msra.mxu1 %v319_v47  ;;  %v2148_v47 = vld [vmem:[%s2020_s4 + $0x160] sm:$0xff] }
  0x7c   : > { %383 = vmatprep.subr.mxu0 %v318_v48  ;;  %1445 = vmatprep.subr.mxu1 %v318_v48  ;;  %v254_v48 = vld [vmem:[%s2020_s4 + $0x178] sm:$0xff] }
  0x7d   : > { %384 = vmatpush2.msra.mxu0 %v317_v49  ;;  %1477 = vmatpush2.msra.mxu1 %v317_v49  ;;  %v611_v49 = vmul.f32 %v2033_v0, %v2136_v44 }
  0x7e   : > { %385 = vmatprep.subr.mxu0 %v316_v50  ;;  %1446 = vmatprep.subr.mxu1 %v316_v50  ;;  %v612_v50 = vmul.f32 %v2033_v0, %v2139_v45 }
  0x7f   : > { %386 = vmatpush2.msra.mxu0 %v315_v51  ;;  %1478 = vmatpush2.msra.mxu1 %v315_v51  ;;  %v2156_v51 = vld [vmem:[%s2020_s4 + $0xe8] sm:$0xff] }
  0x80   : > { %387 = vmatprep.subr.mxu0 %v314_v52  ;;  %1447 = vmatprep.subr.mxu1 %v314_v52  ;;  %v2159_v52 = vld [vmem:[%s2020_s4 + $0xf8] sm:$0xff] }
  0x81   : > { %388 = vmatpush2.msra.mxu0 %v313_v53  ;;  %1479 = vmatpush2.msra.mxu1 %v313_v53  ;;  %v2164_v53 = vld [vmem:[%s2020_s4 + $0x70] sm:$0xff] }
  0x82   : > { %389 = vmatprep.subr.mxu0 %v312_v54  ;;  %1448 = vmatprep.subr.mxu1 %v312_v54  ;;  %2861 = vst [vmem:[#allocation12_spill] sm:$0xff] %v2164_v53  ;;  %v2167_v54 = vld [vmem:[%s2020_s4 + $0x170] sm:$0xff] }
  0x83   : > { %390 = vmatpush2.msra.mxu0 %v311_v55  ;;  %1480 = vmatpush2.msra.mxu1 %v311_v55  ;;  %2862 = vst [vmem:[#allocation13_spill] sm:$0xff] %v2167_v54  ;;  %v256_v55 = vld [vmem:[%s2020_s4 + $0x188] sm:$0xff] }
  0x84   : > { %391 = vmatprep.subr.mxu0 %v310_v56  ;;  %1449 = vmatprep.subr.mxu1 %v310_v56  ;;  %v613_v56 = vmul.f32 %v2033_v0, %v2156_v51 }
  0x85   : > { %392 = vmatpush2.msra.mxu0 %v309_v57  ;;  %1481 = vmatpush2.msra.mxu1 %v309_v57  ;;  %v614_v57 = vmul.f32 %v2033_v0, %v2159_v52 }
  0x86   : > { %393 = vmatprep.subr.mxu0 %v308_v58  ;;  %1450 = vmatprep.subr.mxu1 %v308_v58  ;;  %v2177_v58 = vld [vmem:[%s2020_s4 + $0x80] sm:$0xff] }
  0x87   : > { %394 = vmatpush2.msra.mxu0 %v307_v59  ;;  %1482 = vmatpush2.msra.mxu1 %v307_v59  ;;  %2863 = vst [vmem:[#allocation14_spill] sm:$0xff] %v2177_v58  ;;  %v2180_v59 = vld [vmem:[%s2020_s4 + $0x180] sm:$0xff] }
  0x88   : > { %395 = vmatprep.subr.mxu0 %v306_v60  ;;  %1451 = vmatprep.subr.mxu1 %v306_v60  ;;  %v258_v60 = vld [vmem:[%s2020_s4 + $0x198] sm:$0xff] }
  0x89   : > { %396 = vmatpush2.msra.mxu0 %v305_v61  ;;  %1483 = vmatpush2.msra.mxu1 %v305_v61  ;;  %v615_v61 = vmul.f32 %v2033_v0, %v2037_v2 }
  0x8a   : > { %397 = vmatprep.subr.mxu0 %v304_v62  ;;  %1452 = vmatprep.subr.mxu1 %v304_v62  ;;  %v616_v62 = vmul.f32 %v2033_v0, %v2048_v7 }
  0x8b   : > { %398 = vmatpush2.msra.mxu0 %v303_v63  ;;  %1484 = vmatpush2.msra.mxu1 %v303_v63  ;;  %v2190_v63 = vld [vmem:[%s2020_s4 + $0x90] sm:$0xff] }
  0x8c   : > { %399 = vmatprep.mubr.f32.mxu0 %v208_v1  ;;  %495 = vmatprep.mubr.f32.mxu1 %v2037_v2  ;;  %2864 = vst [vmem:[#allocation15_spill] sm:$0xff] %v2190_v63  ;;  %v2193_v1 = vld [vmem:[%s2020_s4 + $0x190] sm:$0xff]  ;;  %v617_v2 = vmul.f32 %v2033_v0, %v2064_v13 }
  0x8d   : > { %400 = vmatmul.mubr.f32.vlgmr.msra.gmra.mxu0 %v2040_v3  ;;  %496 = vmatmul.mubr.f32.vlgmr.msra.gmra.mxu1 %v2043_v4  ;;  %2865 = vst [vmem:[#allocation16_spill] sm:$0xff] %v2193_v1 }
  0x8e   : > { %405 = vmatprep.mubr.f32.mxu0 %v210_v6  ;;  %501 = vmatprep.mubr.f32.mxu1 %v2048_v7  ;;  %v618_v6 = vmul.f32 %v2033_v0, %v2080_v20  ;;  %v2203_v7 = vld [vmem:[%s2020_s4 + $0xa0] sm:$0xff] }
  0x8f   : > { %631 = vadd.xlane.f32.xlu0 %v599_v8  ;;  %635 = vadd.xlane.f32.xlu1 %v601_v9  ;;  %2866 = vst [vmem:[#allocation17_spill] sm:$0xff] %v2203_v7  ;;  %v2206_v8 = vld [vmem:[%s2020_s4 + $0x1a0] sm:$0xff]  ;;  %v262_v9 = vld [vmem:[%s2020_s4 + $0x1b8] sm:$0xff] }
  0x90   : > { %2867 = vst [vmem:[#allocation18_spill] sm:$0xff] %v2206_v8 }
  0x91   : > { %406 = vmatmul.mubr.f32.gmra.mxu0 %v2057_v10  ;;  %502 = vmatmul.mubr.f32.gmra.mxu1 %v2060_v11 }
  0x92   : > { %411 = vmatprep.mubr.f32.mxu0 %v212_v5  ;;  %507 = vmatprep.mubr.f32.mxu1 %v2064_v13  ;;  %v260_v5 = vld [vmem:[%s2020_s4 + $0x1a8] sm:$0xff]  ;;  %v620_v13 = vmul.f32 %v2033_v0, %v2112_v34 }
  0x93   : > { %633 = vadd.xlane.f32.xlu0 %v600_v14  ;;  %637 = vadd.xlane.f32.xlu1 %v602_v15  ;;  %v2217_v14 = vld [vmem:[%s2020_s4 + $0xb0] sm:$0xff] }
  0x94   : > { %2868 = vst [vmem:[#allocation19_spill] sm:$0xff] %v2217_v14  ;;  %v2220_v15 = vld [vmem:[%s2020_s4 + $0x1b0] sm:$0xff] }
  0x95   : > { %412 = vmatmul.mubr.f32.gmra.mxu0 %v2071_v16  ;;  %508 = vmatmul.mubr.f32.gmra.mxu1 %v2075_v17  ;;  %2869 = vst [vmem:[#allocation20_spill] sm:$0xff] %v2220_v15 }
  0x96   : > { %417 = vmatprep.mubr.f32.mxu0 %v214_v12  ;;  %513 = vmatprep.mubr.f32.mxu1 %v2080_v20  ;;  %v619_v12 = vmul.f32 %v2033_v0, %v2096_v27  ;;  %v622_v20 = vmul.f32 %v2033_v0, %v254_v48 }
  0x97   : > { %639 = vadd.xlane.f32.xlu0 %v603_v21  ;;  %641 = vadd.xlane.f32.xlu1 %v604_v22  ;;  %v2230_v21 = vld [vmem:[%s2020_s4 + $0xc0] sm:$0xff] }
  0x98   : > { %2870 = vst [vmem:[#allocation21_spill] sm:$0xff] %v2230_v21  ;;  %v2233_v22 = vld [vmem:[%s2020_s4 + $0x1c0] sm:$0xff] }
  0x99   : > { %418 = vmatmul.mubr.f32.gmra.mxu0 %v2087_v23  ;;  %514 = vmatmul.mubr.f32.gmra.mxu1 %v2091_v24  ;;  %2871 = vst [vmem:[#allocation22_spill] sm:$0xff] %v2233_v22 }
  0x9a   : > { %423 = vmatprep.mubr.f32.mxu0 %v216_v18  ;;  %519 = vmatprep.mubr.f32.mxu1 %v2096_v27  ;;  %v264_v18 = vld [vmem:[%s2020_s4 + $0x1c8] sm:$0xff]  ;;  %v624_v27 = vmul.f32 %v2033_v0, %v258_v60 }
  0x9b   : > { %643 = vadd.xlane.f32.xlu0 %v605_v28  ;;  %645 = vadd.xlane.f32.xlu1 %v606_v29  ;;  %v2242_v28 = vld [vmem:[%s2020_s4 + $0xd0] sm:$0xff] }
  0x9c   : > { %2872 = vst [vmem:[#allocation23_spill] sm:$0xff] %v2242_v28  ;;  %v2245_v29 = vld [vmem:[%s2020_s4 + $0x1d0] sm:$0xff] }
  0x9d   : > { %424 = vmatmul.mubr.f32.gmra.mxu0 %v2103_v30  ;;  %520 = vmatmul.mubr.f32.gmra.mxu1 %v2107_v31  ;;  %2873 = vst [vmem:[#allocation24_spill] sm:$0xff] %v2245_v29 }
  0x9e   : > { %429 = vmatprep.mubr.f32.mxu0 %v218_v19  ;;  %525 = vmatprep.mubr.f32.mxu1 %v2112_v34  ;;  %v621_v19 = vmul.f32 %v2033_v0, %v2130_v41  ;;  %v626_v34 = vmul.f32 %v2033_v0, %v262_v9 }
  0x9f   : > { %647 = vadd.xlane.f32.xlu0 %v607_v35  ;;  %649 = vadd.xlane.f32.xlu1 %v608_v36  ;;  %v2254_v35 = vld [vmem:[%s2020_s4 + $0xe0] sm:$0xff] }
  0xa0   : > { %2874 = vst [vmem:[#allocation25_spill] sm:$0xff] %v2254_v35  ;;  %v2257_v36 = vld [vmem:[%s2020_s4 + $0x1e0] sm:$0xff] }
  0xa1   : > { %430 = vmatmul.mubr.f32.gmra.mxu0 %v2119_v37  ;;  %526 = vmatmul.mubr.f32.gmra.mxu1 %v2123_v38  ;;  %2875 = vst [vmem:[#allocation26_spill] sm:$0xff] %v2257_v36 }
  0xa2   : > { %435 = vmatprep.mubr.f32.mxu0 %v220_v25  ;;  %531 = vmatprep.mubr.f32.mxu1 %v2130_v41  ;;  %v266_v25 = vld [vmem:[%s2020_s4 + $0x1d8] sm:$0xff] }
  0xa3   : > { %651 = vadd.xlane.f32.xlu0 %v609_v42  ;;  %653 = vadd.xlane.f32.xlu1 %v610_v43  ;;  %v628_v41 = vmul.f32 %v2033_v0, %v266_v25  ;;  %v2266_v42 = vld [vmem:[%s2020_s4 + $0xf0] sm:$0xff] }
  0xa4   : > { %2876 = vst [vmem:[#allocation27_spill] sm:$0xff] %v2266_v42  ;;  %v2269_v43 = vld [vmem:[%s2020_s4 + $0x1f0] sm:$0xff] }
  0xa5   : > { %436 = vmatmul.mubr.f32.gmra.mxu0 %v2145_v46  ;;  %532 = vmatmul.mubr.f32.gmra.mxu1 %v2148_v47  ;;  %2877 = vst [vmem:[#allocation28_spill] sm:$0xff] %v2269_v43 }
  0xa6   : > { %441 = vmatprep.mubr.f32.mxu0 %v222_v26  ;;  %537 = vmatprep.mubr.f32.mxu1 %v254_v48  ;;  %v623_v26 = vmul.f32 %v2033_v0, %v256_v55 }
  0xa7   : > { %655 = vadd.xlane.f32.xlu0 %v611_v49  ;;  %657 = vadd.xlane.f32.xlu1 %v612_v50 }
  0xa9   : > { %442 = vmatmul.mubr.f32.gmra.mxu0 %v2164_v53  ;;  %538 = vmatmul.mubr.f32.gmra.mxu1 %v2167_v54 }
  0xaa   : > { %447 = vmatprep.mubr.f32.mxu0 %v224_v32  ;;  %543 = vmatprep.mubr.f32.mxu1 %v256_v55  ;;  %v268_v32 = vld [vmem:[%s2020_s4 + $0x1e8] sm:$0xff] }
  0xab   : > { %659 = vadd.xlane.f32.xlu0 %v613_v56  ;;  %661 = vadd.xlane.f32.xlu1 %v614_v57 }
  0xad   : > { %448 = vmatmul.mubr.f32.gmra.mxu0 %v2177_v58  ;;  %544 = vmatmul.mubr.f32.gmra.mxu1 %v2180_v59 }
  0xae   : > { %453 = vmatprep.mubr.f32.mxu0 %v226_v33  ;;  %549 = vmatprep.mubr.f32.mxu1 %v258_v60  ;;  %v625_v33 = vmul.f32 %v2033_v0, %v260_v5 }
  0xaf   : > { %663 = vadd.xlane.f32.xlu0 %v615_v61  ;;  %665 = vadd.xlane.f32.xlu1 %v616_v62 }
  0xb1   : > { %454 = vmatmul.mubr.f32.gmra.mxu0 %v2190_v63  ;;  %550 = vmatmul.mubr.f32.gmra.mxu1 %v2193_v1 }
  0xb2   : > { %459 = vmatprep.mubr.f32.mxu0 %v228_v39  ;;  %555 = vmatprep.mubr.f32.mxu1 %v260_v5  ;;  %v270_v39 = vld [vmem:[%s2020_s4 + $0x1f8] sm:$0xff] }
  0xb3   : > { %667 = vadd.xlane.f32.xlu0 %v617_v2  ;;  %669 = vadd.xlane.f32.xlu1 %v618_v6 }
  0xb5   : > { %460 = vmatmul.mubr.f32.gmra.mxu0 %v2203_v7  ;;  %556 = vmatmul.mubr.f32.gmra.mxu1 %v2206_v8 }
  0xb6   : > { %465 = vmatprep.mubr.f32.mxu0 %v2127_v40  ;;  %561 = vmatprep.mubr.f32.mxu1 %v262_v9  ;;  %v627_v40 = vmul.f32 %v2033_v0, %v264_v18 }
  0xb7   : > { %671 = vadd.xlane.f32.xlu0 %v619_v12  ;;  %673 = vadd.xlane.f32.xlu1 %v620_v13 }
  0xb9   : > { %466 = vmatmul.mubr.f32.gmra.mxu0 %v2217_v14  ;;  %562 = vmatmul.mubr.f32.gmra.mxu1 %v2220_v15 }
  0xba   : > { %471 = vmatprep.mubr.f32.mxu0 %v2136_v44  ;;  %567 = vmatprep.mubr.f32.mxu1 %v264_v18  ;;  %v629_v44 = vmul.f32 %v2033_v0, %v268_v32 }
  0xbb   : > { %675 = vadd.xlane.f32.xlu0 %v621_v19  ;;  %677 = vadd.xlane.f32.xlu1 %v622_v20 }
  0xbd   : > { %472 = vmatmul.mubr.f32.gmra.mxu0 %v2230_v21  ;;  %568 = vmatmul.mubr.f32.gmra.mxu1 %v2233_v22 }
  0xbe   : > { %477 = vmatprep.mubr.f32.mxu0 %v2139_v45  ;;  %573 = vmatprep.mubr.f32.mxu1 %v266_v25  ;;  %v630_v45 = vmul.f32 %v2033_v0, %v270_v39 }
  0xbf   : > { %679 = vadd.xlane.f32.xlu0 %v623_v26  ;;  %681 = vadd.xlane.f32.xlu1 %v624_v27 }
  0xc1   : > { %478 = vmatmul.mubr.f32.gmra.mxu0 %v2242_v28  ;;  %574 = vmatmul.mubr.f32.gmra.mxu1 %v2245_v29 }
  0xc2   : > { %483 = vmatprep.mubr.f32.mxu0 %v2156_v51  ;;  %579 = vmatprep.mubr.f32.mxu1 %v268_v32 }
  0xc3   : > { %683 = vadd.xlane.f32.xlu0 %v625_v33  ;;  %685 = vadd.xlane.f32.xlu1 %v626_v34 }
  0xc5   : > { %484 = vmatmul.mubr.f32.gmra.mxu0 %v2254_v35  ;;  %580 = vmatmul.mubr.f32.gmra.mxu1 %v2257_v36 }
  0xc6   : > { %489 = vmatprep.mubr.f32.mxu0 %v2159_v52  ;;  %585 = vmatprep.mubr.f32.mxu1 %v270_v39 }
  0xc7   : > { %687 = vadd.xlane.f32.xlu0 %v627_v40  ;;  %689 = vadd.xlane.f32.xlu1 %v628_v41 }
  0xc9   : > { %490 = vmatmul.mubr.f32.gmra.mxu0 %v2266_v42  ;;  %586 = vmatmul.mubr.f32.gmra.mxu1 %v2269_v43 }
  0xcb   : > { %691 = vadd.xlane.f32.xlu0 %v629_v44  ;;  %693 = vadd.xlane.f32.xlu1 %v630_v45 }
 0x118   : > { %v2275_v48 = vpop.xlane.xlu0 %631  ;;  %v2277_v49 = vpop.xlane.xlu1 %635 }
 0x11c   : > { %v2279_v50 = vpop.xlane.xlu0 %633  ;;  %v2281_v51 = vpop.xlane.xlu1 %637 }
 0x120   : > { %v2283_v52 = vpop.xlane.xlu0 %639  ;;  %v2285_v55 = vpop.xlane.xlu1 %641 }
 0x124   : > { %v2287_v56 = vpop.xlane.xlu0 %643  ;;  %v2289_v0 = vpop.xlane.xlu1 %645 }
 0x128   : > { %v2291_v57 = vpop.xlane.xlu0 %647  ;;  %v2293_v60 = vpop.xlane.xlu1 %649 }
 0x12c   : > { %v2295_v61 = vpop.xlane.xlu0 %651  ;;  %v2297_v62 = vpop.xlane.xlu1 %653 }
 0x130   : > { %v2299_v5 = vpop.xlane.xlu0 %655  ;;  %v2301_v9 = vpop.xlane.xlu1 %657 }
 0x131   : > { %2878 = vst [vmem:[#allocation29_spill] sm:$0xff] %v2301_v9 }
 0x134   : > { %v2307_v26 = vpop.xlane.xlu0 %659  ;;  %v2313_v39 = vpop.xlane.xlu1 %661 }
 0x135   : > { %2879 = vst [vmem:[#allocation30_spill] sm:$0xff] %v2307_v26  ;;  %2880 = vst [vmem:[#allocation31_spill] sm:$0xff] %v2313_v39 }
 0x14d   : > { %v401_v2 = vpop.f32.mrf.mxu0  ;;  %v497_v6 = vpop.f32.mrf.mxu1 }
 0x14e   : > { %v1381_v12 = vmul.f32 -1.442695, %v401_v2  ;;  %v1397_v13 = vmul.f32 -1.442695, %v497_v6 }
 0x14f   : > { %v2303_v18 = vpop.f32.mrf.mxu1  ;;  %v2305_v19 = vpop.f32.mrf.mxu0 }
 0x150   : > { %1546 = vpow2.f32 %v1381_v12  ;;  %v664_v12 = vpop.xlane.xlu0 %663 }
 0x151   : > { %1548 = vpow2.f32 %v1397_v13  ;;  %v407_v20 = vpop.f32.mrf.mxu0  ;;  %v503_v25 = vpop.f32.mrf.mxu1 }
 0x152   : > { %v1382_v27 = vmul.f32 -1.442695, %v407_v20  ;;  %v1398_v32 = vmul.f32 -1.442695, %v503_v25  ;;  %v2319_v25 = vpop.xlane.xlu1 %665 }
 0x153   : > { %v2309_v33 = vpop.f32.mrf.mxu1  ;;  %v2311_v34 = vpop.f32.mrf.mxu0 }
 0x154   : > { %1550 = vpow2.f32 %v1382_v27 }
 0x155   : > { %1552 = vpow2.f32 %v1398_v32  ;;  %v413_v40 = vpop.f32.mrf.mxu0  ;;  %v509_v41 = vpop.f32.mrf.mxu1 }
 0x156   : > { %v1383_v44 = vmul.f32 -1.442695, %v413_v40  ;;  %v1399_v45 = vmul.f32 -1.442695, %v509_v41  ;;  %v2325_v32 = vpop.xlane.xlu0 %667 }
 0x157   : > { %v2315_v2 = vpop.f32.mrf.mxu1  ;;  %v2317_v6 = vpop.f32.mrf.mxu0 }
 0x158   : > { %1554 = vpow2.f32 %v1383_v44 }
 0x159   : > { %1556 = vpow2.f32 %v1399_v45  ;;  %v419_v13 = vpop.f32.mrf.mxu0  ;;  %v515_v20 = vpop.f32.mrf.mxu1 }
 0x15a   : > { %v1384_v43 = vmul.f32 -1.442695, %v419_v13  ;;  %v1400_v42 = vmul.f32 -1.442695, %v515_v20  ;;  %v670_v45 = vpop.xlane.xlu1 %669  ;;  %v672_v20 = vpop.xlane.xlu0 %671 }
 0x15b   : > { %v2321_v39 = vpop.f32.mrf.mxu1  ;;  %v2323_v27 = vpop.f32.mrf.mxu0 }
 0x15c   : > { %2881 = vst [vmem:[#allocation32_spill] sm:$0xff] %v2323_v27  ;;  %1558 = vpow2.f32 %v1384_v43  ;;  %v887_v43 = vmul.f32 %v2275_v48, %v2040_v3  ;;  %v2351_v27 = vmul.f32 %v2283_v52, %v2103_v30  ;;  %v2371_v52 = vmul.f32 %v2293_v60, %v2190_v63 }
 0x15d   : > { %v1547_v40 = vpop.eup %1546  ;;  %1560 = vpow2.f32 %v1400_v42  ;;  %v425_v41 = vpop.f32.mrf.mxu0  ;;  %v2335_v42 = vmul.f32 %v2277_v49, %v2071_v16 }
 0x15e   : > { %v521_v36 = vpop.f32.mrf.mxu1  ;;  %v1549_v26 = vpop.eup %1548  ;;  %v791_v44 = vadd.f32 1.0, %v1547_v40  ;;  %v1385_v35 = vmul.f32 -1.442695, %v425_v41 }
 0x15f   : > { %v807_v29 = vadd.f32 1.0, %v1549_v26  ;;  %v1401_v22 = vmul.f32 -1.442695, %v521_v36  ;;  %v2329_v13 = vpop.f32.mrf.mxu0  ;;  %v2339_v36 = vmul.f32 %v2279_v50, %v2057_v10  ;;  %v2343_v26 = vmul.f32 %v2281_v51, %v2087_v23 }
 0x160   : > { %v2327_v9 = vpop.f32.mrf.mxu1  ;;  %2883 = vst [vmem:[#allocation34_spill] sm:$0xff] %v2329_v13  ;;  %1562 = vrcp.f32 %v791_v44  ;;  %v674_v13 = vpop.xlane.xlu1 %673  ;;  %v2355_v50 = vmul.f32 %v2285_v55, %v2119_v37  ;;  %v2367_v51 = vmul.f32 %v2291_v57, %v2177_v58  ;;  %v2380_v57 = vmul.f32 %v2297_v62, %v2217_v14 }
 0x161   : > { %2882 = vst [vmem:[#allocation33_spill] sm:$0xff] %v2327_v9  ;;  %v1551_v28 = vpop.eup %1550  ;;  %1564 = vrcp.f32 %v807_v29  ;;  %v431_v40 = vpop.f32.mrf.mxu0 }
 0x162   : > { %v527_v15 = vpop.f32.mrf.mxu1  ;;  %v1553_v41 = vpop.eup %1552  ;;  %v792_v44 = vadd.f32 1.0, %v1551_v28  ;;  %1566 = vpow2.f32 %v1385_v35  ;;  %v1386_v9 = vmul.f32 -1.442695, %v431_v40  ;;  %v2359_v28 = vmul.f32 %v2287_v56, %v2145_v46  ;;  %2885 = vst [vmem:[#allocation36_spill] sm:$0xff] %v2380_v57 }
 0x163   : > { %v808_v48 = vadd.f32 1.0, %v1553_v41  ;;  %1568 = vpow2.f32 %v1401_v22  ;;  %v1402_v49 = vmul.f32 -1.442695, %v527_v15  ;;  %v2347_v29 = vpop.f32.mrf.mxu0  ;;  %v676_v22 = vpop.xlane.xlu0 %675  ;;  %v2363_v15 = vmul.f32 %v2289_v0, %v2164_v53 }
 0x164   : > { %v2345_v16 = vpop.f32.mrf.mxu1  ;;  %1570 = vrcp.f32 %v792_v44  ;;  %v2375_v41 = vmul.f32 %v2295_v61, %v2203_v7  ;;  %v903_v44 = vmul.f32 %v664_v12, %v2043_v4  ;;  %v678_v53 = vpop.xlane.xlu1 %677  ;;  %v2388_v61 = vmul.f32 %v2299_v5, %v2230_v21 }
 0x165   : > { %v1555_v35 = vpop.eup %1554  ;;  %1572 = vrcp.f32 %v808_v48  ;;  %v437_v55 = vpop.f32.mrf.mxu0  ;;  %v919_v12 = vadd.f32 %v887_v43, %v2305_v19 }
 0x166   : > { %v533_v40 = vpop.f32.mrf.mxu1  ;;  %v1557_v56 = vpop.eup %1556  ;;  %2884 = vst [vmem:[#allocation35_spill] sm:$0xff] %v2375_v41  ;;  %v793_v0 = vadd.f32 1.0, %v1555_v35  ;;  %1574 = vpow2.f32 %v1386_v9  ;;  %v1387_v60 = vmul.f32 -1.442695, %v437_v55  ;;  %2886 = vst [vmem:[#allocation37_spill] sm:$0xff] %v2388_v61  ;;  %v904_v9 = vmul.f32 %v2319_v25, %v2060_v11 }
 0x167   : > { %1576 = vpow2.f32 %v1402_v49  ;;  %v1403_v63 = vmul.f32 -1.442695, %v533_v40  ;;  %v2384_v58 = vpop.f32.mrf.mxu0  ;;  %v809_v35 = vadd.f32 1.0, %v1557_v56  ;;  %v680_v7 = vpop.xlane.xlu0 %679  ;;  %v905_v49 = vmul.f32 %v2325_v32, %v2075_v17 }
 0x168   : > { %v2382_v48 = vpop.f32.mrf.mxu1  ;;  %1578 = vrcp.f32 %v793_v0  ;;  %v906_v55 = vmul.f32 %v670_v45, %v2091_v24  ;;  %v2397_v40 = vmul.f32 %v672_v20, %v2107_v31  ;;  %v935_v19 = vadd.f32 %v903_v44, %v2303_v18  ;;  %v682_v56 = vpop.xlane.xlu1 %681 }
 0x169   : > { %v1559_v62 = vpop.eup %1558  ;;  %v443_v14 = vpop.f32.mrf.mxu0  ;;  %v2401_v25 = vmul.f32 %v674_v13, %v2123_v38  ;;  %1580 = vpow2.f32 %v1387_v60  ;;  %v2404_v0 = vmul.f32 %v676_v22, %v2148_v47  ;;  %v951_v57 = vmax.f32 %v919_v12, 0.0 }
 0x16a   : > { %v539_v5 = vpop.f32.mrf.mxu1  ;;  %v1561_v21 = vpop.eup %1560  ;;  %v794_v43 = vadd.f32 1.0, %v1559_v62  ;;  %1582 = vpow2.f32 %v1403_v63  ;;  %v1388_v32 = vmul.f32 -1.442695, %v443_v14  ;;  %v2411_v18 = vmul.f32 %v678_v53, %v2167_v54 }
 0x16b   : > { %v1404_v45 = vmul.f32 -1.442695, %v539_v5  ;;  %v2408_v20 = vpop.f32.mrf.mxu0  ;;  %1584 = vrcp.f32 %v809_v35  ;;  %v810_v41 = vadd.f32 1.0, %v1561_v21  ;;  %v684_v13 = vpop.xlane.xlu0 %683  ;;  %v936_v60 = vadd.f32 %v904_v9, %v2309_v33 }
 0x16c   : > { %v2406_v61 = vpop.f32.mrf.mxu1  ;;  %1586 = vrcp.f32 %v794_v43  ;;  %v2415_v14 = vmul.f32 %v680_v7, %v2180_v59  ;;  %v2418_v62 = vmul.f32 %v682_v56, %v2193_v1  ;;  %v967_v12 = vmax.f32 %v935_v19, 0.0 }
 0x16d   : > { %v1563_v44 = vpop.eup %1562  ;;  %v449_v63 = vpop.f32.mrf.mxu0  ;;  %v920_v53 = vadd.f32 %v2339_v36, %v2311_v34  ;;  %1588 = vpow2.f32 %v1388_v32  ;;  %v2423_v54 = vadd.f32 %v905_v49, %v2315_v2  ;;  %v2430_v43 = vmul.f32 %v684_v13, %v2206_v8 }
 0x16e   : > { %v545_v22 = vpop.f32.mrf.mxu1  ;;  %v1565_v5 = vpop.eup %1564  ;;  %v983_v35 = vmul.f32 %v1563_v44, %v951_v57  ;;  %1590 = vpow2.f32 %v1404_v45  ;;  %v1389_v33 = vmul.f32 -1.442695, %v449_v63  ;;  %v968_v36 = vmax.f32 %v936_v60, 0.0  ;;  %v2887_v60 = vld [vmem:[#allocation32_spill] sm:$0xff] }
 0x16f   : > { %v1567_v21 = vpop.eup %1566  ;;  %v2427_v7 = vpop.f32.mrf.mxu0  ;;  %v999_v19 = vmul.f32 %v1565_v5, %v967_v12  ;;  %1592 = vrcp.f32 %v810_v41  ;;  %v1405_v44 = vmul.f32 -1.442695, %v545_v22  ;;  %v952_v1 = vmax.f32 %v920_v53, 0.0 }
 0x170   : > { %v2425_v9 = vpop.f32.mrf.mxu1  ;;  %v1569_v56 = vpop.eup %1568  ;;  %v795_v57 = vadd.f32 1.0, %v1567_v21  ;;  %1594 = vpow2.f32 %v1389_v33  ;;  %v2433_v45 = vadd.f32 %v983_v35, %v2040_v3  ;;  %v921_v13 = vadd.f32 %v2335_v42, %v2317_v6 }
 0x171   : > { %v1571_v34 = vpop.eup %1570  ;;  %v811_v32 = vadd.f32 1.0, %v1569_v56  ;;  %v455_v2 = vpop.f32.mrf.mxu0  ;;  %v2438_v8 = vadd.f32 %v906_v55, %v2321_v39  ;;  %v969_v22 = vmax.f32 %v2423_v54, 0.0  ;;  %v2443_v5 = vadd.f32 %v2343_v26, %v2887_v60 }
 0x172   : > { %v551_v49 = vpop.f32.mrf.mxu1  ;;  %v1573_v63 = vpop.eup %1572  ;;  %1596 = vrcp.f32 %v795_v57  ;;  %v1390_v12 = vmul.f32 -1.442695, %v455_v2  ;;  %v2450_v39 = vadd.f32 %v999_v19, %v2043_v4  ;;  %v984_v42 = vmul.f32 %v1571_v34, %v952_v1  ;;  %v2888_v2 = vld [vmem:[#allocation33_spill] sm:$0xff] }
 0x173   : > { %v1575_v41 = vpop.eup %1574  ;;  %1598 = vrcp.f32 %v811_v32  ;;  %v2447_v35 = vpop.f32.mrf.mxu0  ;;  %v1406_v6 = vmul.f32 -1.442695, %v551_v49  ;;  %v1047_v54 = vmul.f32 %v2433_v45, %v2433_v45  ;;  %v953_v57 = vmax.f32 %v921_v13, 0.0  ;;  %v2889_v13 = vld [vmem:[#allocation34_spill] sm:$0xff] }
 0x174   : > { %v2445_v3 = vpop.f32.mrf.mxu1  ;;  %v1577_v53 = vpop.eup %1576  ;;  %v796_v21 = vadd.f32 1.0, %v1575_v41  ;;  %1600 = vpow2.f32 %v1405_v44  ;;  %v2457_v41 = vadd.f32 %v2397_v40, %v2888_v2  ;;  %v1000_v4 = vmul.f32 %v1573_v63, %v968_v36 }
 0x175   : > { %v812_v55 = vadd.f32 1.0, %v1577_v53  ;;  %1602 = vpow2.f32 %v1390_v12  ;;  %v461_v26 = vpop.f32.mrf.mxu0  ;;  %v1579_v56 = vpop.eup %1578  ;;  %v954_v1 = vmax.f32 %v2443_v5, 0.0  ;;  %1079 = vadd.xlane.f32.xlu0 %v1047_v54  ;;  %v2466_v12 = vadd.f32 %v2351_v27, %v2889_v13 }
 0x176   : > { %v557_v33 = vpop.f32.mrf.mxu1  ;;  %1604 = vrcp.f32 %v796_v21  ;;  %v1581_v44 = vpop.eup %1580  ;;  %v1391_v19 = vmul.f32 -1.442695, %v461_v26  ;;  %v1063_v36 = vmul.f32 %v2450_v39, %v2450_v39  ;;  %v2471_v63 = vadd.f32 %v984_v42, %v2057_v10 }
 0x177   : > { %1606 = vrcp.f32 %v812_v55  ;;  %v2462_v49 = vpop.f32.mrf.mxu0  ;;  %v1583_v60 = vpop.eup %1582  ;;  %v797_v53 = vadd.f32 1.0, %v1581_v44  ;;  %v1407_v40 = vmul.f32 -1.442695, %v557_v33  ;;  %v985_v26 = vmul.f32 %v1579_v56, %v953_v57 }
 0x178   : > { %v2460_v34 = vpop.f32.mrf.mxu1  ;;  %1608 = vpow2.f32 %v1406_v6  ;;  %v1585_v21 = vpop.eup %1584  ;;  %v813_v2 = vadd.f32 1.0, %v1583_v60  ;;  %2890 = vst [vmem:[#allocation32_spill] sm:$0xff] %v2471_v63  ;;  %v2476_v27 = vadd.f32 %v2401_v25, %v2345_v16  ;;  %v1048_v33 = vmul.f32 %v2471_v63, %v2471_v63 }
 0x179   : > { %1610 = vpow2.f32 %v1391_v19  ;;  %v467_v5 = vpop.f32.mrf.mxu0  ;;  %v1587_v54 = vpop.eup %1586  ;;  %1111 = vadd.xlane.f32.xlu0 %v1063_v36  ;;  %v2485_v56 = vadd.f32 %v1000_v4, %v2060_v11  ;;  %v2489_v16 = vadd.f32 %v2355_v50, %v2347_v29  ;;  %v1001_v13 = vmul.f32 %v1585_v21, %v969_v22  ;;  %v2891_v4 = vld [vmem:[#allocation11_spill] sm:$0xff] }
 0x17a   : > { %v563_v55 = vpop.f32.mrf.mxu1  ;;  %1612 = vrcp.f32 %v797_v53  ;;  %v1589_v6 = vpop.eup %1588  ;;  %v1392_v44 = vmul.f32 -1.442695, %v467_v5  ;;  %v955_v53 = vmax.f32 %v2466_v12, 0.0  ;;  %1081 = vadd.xlane.f32.xlu1 %v1048_v33  ;;  %v986_v11 = vmul.f32 %v1587_v54, %v954_v1 }
 0x17b   : > { %1614 = vrcp.f32 %v813_v2  ;;  %v2482_v42 = vpop.f32.mrf.mxu0  ;;  %v1591_v57 = vpop.eup %1590  ;;  %v798_v25 = vadd.f32 1.0, %v1589_v6  ;;  %v1408_v19 = vmul.f32 -1.442695, %v563_v55  ;;  %v2493_v63 = vadd.f32 %v985_v26, %v2891_v4 }
 0x17c   : > { %v2480_v10 = vpop.f32.mrf.mxu1  ;;  %1616 = vpow2.f32 %v1407_v40  ;;  %v1593_v60 = vpop.eup %1592  ;;  %v814_v2 = vadd.f32 1.0, %v1591_v57  ;;  %v1064_v22 = vmul.f32 %v2485_v56, %v2485_v56  ;;  %v972_v33 = vmax.f32 %v2476_v27, 0.0 }
 0x17d   : > { %1618 = vpow2.f32 %v1392_v44  ;;  %v473_v36 = vpop.f32.mrf.mxu0  ;;  %v1595_v32 = vpop.eup %1594  ;;  %v956_v1 = vmax.f32 %v2489_v16, 0.0  ;;  %v1049_v54 = vmul.f32 %v2493_v63, %v2493_v63  ;;  %v2511_v44 = vadd.f32 %v2359_v28, %v2384_v58 }
 0x17e   : > { %v569_v5 = vpop.f32.mrf.mxu1  ;;  %1620 = vrcp.f32 %v798_v25  ;;  %v1393_v29 = vmul.f32 -1.442695, %v473_v36  ;;  %v799_v40 = vadd.f32 1.0, %v1595_v32  ;;  %v2507_v32 = vadd.f32 %v2404_v0, %v2382_v48  ;;  %1113 = vadd.xlane.f32.xlu1 %v1064_v22 }
 0x17f   : > { %v1597_v50 = vpop.eup %1596  ;;  %1622 = vrcp.f32 %v814_v2  ;;  %v1409_v21 = vmul.f32 -1.442695, %v569_v5  ;;  %v2499_v55 = vpop.f32.mrf.mxu0  ;;  %v2514_v57 = vadd.f32 %v1001_v13, %v2075_v17  ;;  %1083 = vadd.xlane.f32.xlu0 %v1049_v54  ;;  %v2519_v48 = vadd.f32 %v986_v11, %v2087_v23 }
 0x180   : > { %v2497_v12 = vpop.f32.mrf.mxu1  ;;  %v1599_v6 = vpop.eup %1598  ;;  %1624 = vpow2.f32 %v1408_v19  ;;  %v2892_v19 = vmax.f32 %v2438_v8, 0.0  ;;  %v987_v58 = vmul.f32 %v1597_v50, %v955_v53  ;;  %v2523_v28 = vadd.f32 %v2411_v18, %v2406_v61 }
 0x181   : > { %v1601_v26 = vpop.eup %1600  ;;  %1626 = vrcp.f32 %v799_v40  ;;  %v479_v27 = vpop.f32.mrf.mxu0  ;;  %v1050_v23 = vmul.f32 %v2519_v48, %v2519_v48  ;;  %v973_v4 = vmax.f32 %v2507_v32, 0.0  ;;  %v957_v61 = vmax.f32 %v2511_v44, 0.0 }
 0x182   : > { %v575_v16 = vpop.f32.mrf.mxu1  ;;  %v1603_v25 = vpop.eup %1602  ;;  %v1002_v2 = vmul.f32 %v1593_v60, %v2892_v19  ;;  %v815_v36 = vadd.f32 1.0, %v1601_v26  ;;  %1628 = vpow2.f32 %v1393_v29  ;;  %v1065_v60 = vmul.f32 %v2514_v57, %v2514_v57 }
 0x183   : > { %v1605_v0 = vpop.eup %1604  ;;  %v800_v17 = vadd.f32 1.0, %v1603_v25  ;;  %1630 = vpow2.f32 %v1409_v21  ;;  %v2527_v5 = vpop.f32.mrf.mxu0  ;;  %v1394_v11 = vmul.f32 -1.442695, %v479_v27  ;;  %v1410_v18 = vmul.f32 -1.442695, %v575_v16  ;;  %1085 = vadd.xlane.f32.xlu1 %v1050_v23 }
 0x184   : > { %v2525_v13 = vpop.f32.mrf.mxu1  ;;  %v1607_v8 = vpop.eup %1606  ;;  %1632 = vrcp.f32 %v815_v36  ;;  %v2893_v22 = vmax.f32 %v2457_v41, 0.0  ;;  %1115 = vadd.xlane.f32.xlu0 %v1065_v60  ;;  %v2538_v26 = vadd.f32 %v1002_v2, %v2091_v24  ;;  %v988_v25 = vmul.f32 %v1605_v0, %v956_v1 }
 0x185   : > { %v1609_v53 = vpop.eup %1608  ;;  %1634 = vrcp.f32 %v800_v17  ;;  %v485_v29 = vpop.f32.mrf.mxu0  ;;  %v2541_v44 = vadd.f32 %v987_v58, %v2103_v30  ;;  %v974_v41 = vmax.f32 %v2523_v28, 0.0  ;;  %v927_v36 = vadd.f32 %v2367_v51, %v2427_v7 }
 0x186   : > { %v581_v50 = vpop.f32.mrf.mxu1  ;;  %v1611_v40 = vpop.eup %1610  ;;  %v1003_v21 = vmul.f32 %v1599_v6, %v2893_v22  ;;  %v816_v54 = vadd.f32 1.0, %v1609_v53  ;;  %1636 = vpow2.f32 %v1394_v11  ;;  %v926_v6 = vadd.f32 %v2363_v15, %v2408_v20 }
 0x187   : > { %v1613_v27 = vpop.eup %1612  ;;  %v801_v32 = vadd.f32 1.0, %v1611_v40  ;;  %1638 = vpow2.f32 %v1410_v18  ;;  %v2543_v16 = vpop.f32.mrf.mxu0  ;;  %v1066_v24 = vmul.f32 %v2538_v26, %v2538_v26  ;;  %v1051_v30 = vmul.f32 %v2541_v44, %v2541_v44 }
 0x188   : > { %v1615_v19 = vpop.eup %1614  ;;  %1640 = vrcp.f32 %v816_v54  ;;  %v2550_v2 = vpop.f32.mrf.mxu1  ;;  %v1395_v0 = vmul.f32 -1.442695, %v485_v29  ;;  %v1004_v28 = vmul.f32 %v1607_v8, %v972_v33  ;;  %v928_v15 = vadd.f32 %v2371_v52, %v2447_v35 }
 0x189   : > { %v1617_v1 = vpop.eup %1616  ;;  %1642 = vrcp.f32 %v801_v32  ;;  %1117 = vadd.xlane.f32.xlu1 %v1066_v24  ;;  %v1411_v17 = vmul.f32 -1.442695, %v581_v50  ;;  %1087 = vadd.xlane.f32.xlu0 %v1051_v30  ;;  %v2559_v11 = vadd.f32 %v1003_v21, %v2107_v31  ;;  %v2562_v51 = vadd.f32 %v988_v25, %v2119_v37  ;;  %v491_v7 = vpop.f32.mrf.mxu0 }
 0x18a   : > { %v1619_v58 = vpop.eup %1618  ;;  %v817_v20 = vadd.f32 1.0, %v1617_v1  ;;  %1644 = vpow2.f32 %v1395_v0  ;;  %v989_v18 = vmul.f32 %v1613_v27, %v957_v61  ;;  %v958_v33 = vmax.f32 %v926_v6, 0.0  ;;  %v587_v35 = vpop.f32.mrf.mxu1 }
 0x18b   : > { %v1621_v60 = vpop.eup %1620  ;;  %v802_v23 = vadd.f32 1.0, %v1619_v58  ;;  %v943_v52 = vadd.f32 %v2415_v14, %v2425_v9  ;;  %v959_v29 = vmax.f32 %v927_v36, 0.0  ;;  %v1067_v50 = vmul.f32 %v2559_v11, %v2559_v11  ;;  %v2894_v58 = vld [vmem:[#allocation35_spill] sm:$0xff] }
 0x18c   : > { %v1623_v53 = vpop.eup %1622  ;;  %1646 = vrcp.f32 %v817_v20  ;;  %v1052_v31 = vmul.f32 %v2562_v51, %v2562_v51  ;;  %v960_v40 = vmax.f32 %v928_v15, 0.0  ;;  %v1396_v61 = vmul.f32 -1.442695, %v491_v7  ;;  %v686_v7 = vpop.xlane.xlu1 %685 }
 0x18d   : > { %v1625_v8 = vpop.eup %1624  ;;  %1648 = vrcp.f32 %v802_v23  ;;  %v1005_v54 = vmul.f32 %v1615_v19, %v973_v4  ;;  %v990_v27 = vmul.f32 %v1621_v60, %v958_v33  ;;  %1119 = vadd.xlane.f32.xlu0 %v1067_v50  ;;  %v1412_v14 = vmul.f32 -1.442695, %v587_v35  ;;  %v2897_v33 = vld [vmem:[#allocation14_spill] sm:$0xff]  ;;  %v2898_v35 = vld [vmem:[#allocation13_spill] sm:$0xff] }
 0x18e   : > { %v1627_v37 = vpop.eup %1626  ;;  %v818_v22 = vadd.f32 1.0, %v1625_v8  ;;  %1650 = vpow2.f32 %v1411_v17  ;;  %1089 = vadd.xlane.f32.xlu1 %v1052_v31  ;;  %v2571_v9 = vadd.f32 %v1004_v28, %v2123_v38  ;;  %v2574_v24 = vadd.f32 %v989_v18, %v2145_v46  ;;  %v2895_v17 = vld [vmem:[#allocation12_spill] sm:$0xff] }
 0x18f   : > { %v1629_v21 = vpop.eup %1628  ;;  %v991_v32 = vmul.f32 %v1627_v37, %v959_v29  ;;  %v1006_v36 = vmul.f32 %v1623_v53, %v974_v41  ;;  %v975_v0 = vmax.f32 %v943_v52, 0.0  ;;  %v929_v38 = vadd.f32 %v2894_v58, %v2462_v49  ;;  %v2896_v49 = vld [vmem:[#allocation36_spill] sm:$0xff]  ;;  %v2903_v58 = vld [vmem:[#allocation29_spill] sm:$0xff] }
 0x190   : > { %v1631_v25 = vpop.eup %1630  ;;  %1652 = vrcp.f32 %v818_v22  ;;  %v803_v6 = vadd.f32 1.0, %v1629_v21  ;;  %v1068_v4 = vmul.f32 %v2571_v9, %v2571_v9  ;;  %v1053_v28 = vmul.f32 %v2574_v24, %v2574_v24  ;;  %v2899_v22 = vld [vmem:[#allocation20_spill] sm:$0xff]  ;;  %v2900_v21 = vld [vmem:[#allocation15_spill] sm:$0xff] }
 0x191   : > { %v1633_v1 = vpop.eup %1632  ;;  %v819_v30 = vadd.f32 1.0, %v1631_v25  ;;  %1654 = vpow2.f32 %v1396_v61  ;;  %v944_v46 = vadd.f32 %v2418_v62, %v2445_v3  ;;  %v2585_v41 = vadd.f32 %v1005_v54, %v2148_v47 }
 0x192   : > { %v1635_v19 = vpop.eup %1634  ;;  %1656 = vrcp.f32 %v803_v6  ;;  %1121 = vadd.xlane.f32.xlu1 %v1068_v4  ;;  %v2588_v60 = vadd.f32 %v990_v27, %v2895_v17  ;;  %v930_v53 = vadd.f32 %v2896_v49, %v2482_v42  ;;  %1091 = vadd.xlane.f32.xlu0 %v1053_v28  ;;  %v2593_v52 = vadd.f32 %v991_v32, %v2897_v33  ;;  %v2901_v32 = vld [vmem:[#allocation37_spill] sm:$0xff]  ;;  %v688_v4 = vpop.xlane.xlu0 %687 }
 0x193   : > { %v1637_v15 = vpop.eup %1636  ;;  %v992_v20 = vmul.f32 %v1635_v19, %v960_v40  ;;  %1658 = vpow2.f32 %v1412_v14  ;;  %v2598_v8 = vadd.f32 %v1006_v36, %v2898_v35  ;;  %v1007_v50 = vmul.f32 %v1633_v1, %v975_v0  ;;  %v2902_v0 = vld [vmem:[#allocation23_spill] sm:$0xff]  ;;  %v690_v49 = vpop.xlane.xlu1 %689 }
 0x194   : > { %v1639_v23 = vpop.eup %1638  ;;  %v804_v18 = vadd.f32 1.0, %v1637_v15  ;;  %1660 = vrcp.f32 %v819_v30  ;;  %v1054_v47 = vmul.f32 %v2588_v60, %v2588_v60  ;;  %v961_v31 = vmax.f32 %v929_v38, 0.0 }
 0x195   : > { %v1641_v62 = vpop.eup %1640  ;;  %v820_v3 = vadd.f32 1.0, %v1639_v23  ;;  %v1069_v42 = vmul.f32 %v2585_v41, %v2585_v41  ;;  %v976_v37 = vmax.f32 %v944_v46, 0.0  ;;  %v945_v40 = vadd.f32 %v2430_v43, %v2460_v34  ;;  %v2904_v23 = vld [vmem:[#allocation22_spill] sm:$0xff] }
 0x196   : > { %v1643_v29 = vpop.eup %1642  ;;  %1662 = vrcp.f32 %v804_v18  ;;  %v914_v61 = vmul.f32 %v686_v7, %v2899_v22  ;;  %1093 = vadd.xlane.f32.xlu1 %v1054_v47  ;;  %v2606_v54 = vadd.f32 %v992_v20, %v2900_v21  ;;  %v962_v25 = vmax.f32 %v930_v53, 0.0  ;;  %v2905_v18 = vld [vmem:[#allocation17_spill] sm:$0xff] }
 0x197   : > { %v1645_v27 = vpop.eup %1644  ;;  %v993_v14 = vmul.f32 %v1643_v29, %v961_v31  ;;  %v931_v6 = vadd.f32 %v2901_v32, %v2499_v55  ;;  %1123 = vadd.xlane.f32.xlu0 %v1069_v42  ;;  %v1055_v1 = vmul.f32 %v2593_v52, %v2593_v52  ;;  %v1008_v30 = vmul.f32 %v1641_v62, %v976_v37  ;;  %v2907_v37 = vld [vmem:[#allocation24_spill] sm:$0xff] }
 0x198   : > { %1664 = vrcp.f32 %v820_v3  ;;  %v805_v43 = vadd.f32 1.0, %v1645_v27  ;;  %v1070_v34 = vmul.f32 %v2598_v8, %v2598_v8  ;;  %v900_v38 = vmul.f32 %v2903_v58, %v2902_v0  ;;  %v2906_v3 = vld [vmem:[#allocation16_spill] sm:$0xff] }
 0x199   : > { %v1647_v36 = vpop.eup %1646  ;;  %v2617_v28 = vadd.f32 %v1007_v50, %v2180_v59  ;;  %v946_v15 = vadd.f32 %v914_v61, %v2480_v10  ;;  %v1056_v20 = vmul.f32 %v2606_v54, %v2606_v54  ;;  %v977_v17 = vmax.f32 %v945_v40, 0.0  ;;  %v2908_v61 = vld [vmem:[#allocation19_spill] sm:$0xff] }
 0x19a   : > { %v1649_v19 = vpop.eup %1648  ;;  %1666 = vrcp.f32 %v805_v43  ;;  %1125 = vadd.xlane.f32.xlu1 %v1070_v34  ;;  %v915_v7 = vmul.f32 %v688_v4, %v2904_v23  ;;  %v2624_v33 = vadd.f32 %v993_v14, %v2905_v18  ;;  %v963_v62 = vmax.f32 %v931_v6, 0.0  ;;  %v2909_v6 = vld [vmem:[#allocation25_spill] sm:$0xff]  ;;  %v694_v18 = vpop.xlane.xlu1 %693 }
 0x19b   : > { %v1651_v55 = vpop.eup %1650  ;;  %v994_v46 = vmul.f32 %v1649_v19, %v962_v25  ;;  %1095 = vadd.xlane.f32.xlu0 %v1055_v1  ;;  %v2627_v47 = vadd.f32 %v1008_v30, %v2906_v3  ;;  %v1009_v35 = vmul.f32 %v1647_v36, %v977_v17  ;;  %v932_v29 = vadd.f32 %v900_v38, %v2527_v5  ;;  %v692_v25 = vpop.xlane.xlu0 %691  ;;  %v2910_v1 = vld [vmem:[#allocation30_spill] sm:$0xff] }
 0x19c   : > { %v821_v53 = vadd.f32 1.0, %v1651_v55  ;;  %v1071_v50 = vmul.f32 %v2617_v28, %v2617_v28  ;;  %v978_v42 = vmax.f32 %v946_v15, 0.0  ;;  %v916_v40 = vmul.f32 %v690_v49, %v2907_v37  ;;  %v2912_v15 = vld [vmem:[#allocation26_spill] sm:$0xff]  ;;  %v2913_v49 = vld [vmem:[#allocation21_spill] sm:$0xff] }
 0x19d   : > { %v1653_v59 = vpop.eup %1652  ;;  %v2634_v21 = vadd.f32 %v994_v46, %v2908_v61  ;;  %v947_v27 = vadd.f32 %v915_v7, %v2497_v12  ;;  %v1057_v5 = vmul.f32 %v2624_v33, %v2624_v33  ;;  %v901_v36 = vmul.f32 %v2910_v1, %v2909_v6  ;;  %v2911_v12 = vld [vmem:[#allocation18_spill] sm:$0xff]  ;;  %v2916_v61 = vld [vmem:[#allocation28_spill] sm:$0xff]  ;;  %v589_v1 = vpop.f32.mrf.mxu1 }
 0x19e   : > { %v1655_v10 = vpop.eup %1654  ;;  %1668 = vrcp.f32 %v821_v53  ;;  %1097 = vadd.xlane.f32.xlu1 %v1056_v20  ;;  %v1010_v30 = vmul.f32 %v1653_v59, %v978_v42  ;;  %v1072_v4 = vmul.f32 %v2627_v47, %v2627_v47  ;;  %v964_v34 = vmax.f32 %v932_v29, 0.0  ;;  %v1738_v59 = vld [vmem:[%s2020_s4 + $0x1b0] sm:$0xff]  ;;  %v2915_v29 = vld [vmem:[#allocation31_spill] sm:$0xff] }
 0x19f   : > { %v1657_v31 = vpop.eup %1656  ;;  %v806_v22 = vadd.f32 1.0, %v1655_v10  ;;  %1127 = vadd.xlane.f32.xlu0 %v1071_v50  ;;  %v2644_v58 = vadd.f32 %v1009_v35, %v2911_v12  ;;  %v948_v55 = vadd.f32 %v916_v40, %v2525_v13  ;;  %v917_v46 = vmul.f32 %v692_v25, %v2912_v15  ;;  %v493_v10 = vpop.f32.mrf.mxu0  ;;  %v2914_v35 = vld [vmem:[#allocation27_spill] sm:$0xff] }
 0x1a0   : > { %v995_v14 = vmul.f32 %v1657_v31, %v963_v62  ;;  %v1659_v32 = vpop.eup %1658  ;;  %v933_v20 = vadd.f32 %v901_v36, %v2543_v16  ;;  %v1058_v17 = vmul.f32 %v2634_v21, %v2634_v21  ;;  %v979_v23 = vmax.f32 %v947_v27, 0.0 }
 0x1a1   : > { %1670 = vrcp.f32 %v806_v22  ;;  %v1661_v43 = vpop.eup %1660  ;;  %v822_v19 = vadd.f32 1.0, %v1659_v32  ;;  %v2655_v62 = vadd.f32 %v1738_v59, %v1010_v30  ;;  %v1073_v16 = vmul.f32 %v2644_v58, %v2644_v58  ;;  %v1739_v30 = vld [vmem:[%s2020_s4 + $0x1c0] sm:$0xff] }
 0x1a2   : > { %1129 = vadd.xlane.f32.xlu1 %v1072_v4  ;;  %v2652_v53 = vadd.f32 %v995_v14, %v2913_v49  ;;  %v1011_v3 = vmul.f32 %v1661_v43, %v979_v23  ;;  %v902_v50 = vmul.f32 %v2915_v29, %v2914_v35  ;;  %v980_v31 = vmax.f32 %v948_v55, 0.0 }
 0x1a3   : > { %v1663_v38 = vpop.eup %1662  ;;  %1672 = vrcp.f32 %v822_v19  ;;  %1099 = vadd.xlane.f32.xlu0 %v1057_v5  ;;  %v965_v42 = vmax.f32 %v933_v20, 0.0  ;;  %v949_v22 = vadd.f32 %v917_v46, %v2550_v2  ;;  %v918_v27 = vmul.f32 %v694_v18, %v2916_v61 }
 0x1a4   : > { %v996_v7 = vmul.f32 %v1663_v38, %v964_v34  ;;  %v1059_v14 = vmul.f32 %v2652_v53, %v2652_v53  ;;  %v934_v32 = vadd.f32 %v902_v50, %v493_v10  ;;  %v1074_v36 = vmul.f32 %v2655_v62, %v2655_v62  ;;  %v1740_v38 = vld [vmem:[%s2020_s4 + $0x1d0] sm:$0xff] }
 0x1a5   : > { %v1665_v13 = vpop.eup %1664  ;;  %v981_v43 = vmax.f32 %v949_v22, 0.0  ;;  %v950_v34 = vadd.f32 %v918_v27, %v589_v1 }
 0x1a6   : > { %1101 = vadd.xlane.f32.xlu1 %v1058_v17  ;;  %v2662_v37 = vadd.f32 %v996_v7, %v2902_v0  ;;  %v1012_v25 = vmul.f32 %v1665_v13, %v980_v31  ;;  %v2671_v0 = vadd.f32 %v1739_v30, %v1011_v3  ;;  %v966_v12 = vmax.f32 %v934_v32, 0.0  ;;  %v1741_v13 = vld [vmem:[%s2020_s4 + $0x1e0] sm:$0xff] }
 0x1a7   : > { %v1667_v40 = vpop.eup %1666  ;;  %1131 = vadd.xlane.f32.xlu0 %v1073_v16  ;;  %v982_v23 = vmax.f32 %v950_v34, 0.0  ;;  %v1742_v16 = vld [vmem:[%s2020_s4 + $0x1f0] sm:$0xff] }
 0x1a8   : > { %v997_v5 = vmul.f32 %v1667_v40, %v965_v42  ;;  %v1060_v2 = vmul.f32 %v2662_v37, %v2662_v37  ;;  %v2679_v55 = vadd.f32 %v1740_v38, %v1012_v25  ;;  %v1075_v20 = vmul.f32 %v2671_v0, %v2671_v0 }
 0x1aa   : > { %1133 = vadd.xlane.f32.xlu1 %v1074_v36  ;;  %v2676_v19 = vadd.f32 %v997_v5, %v2909_v6  ;;  %v1076_v49 = vmul.f32 %v2679_v55, %v2679_v55 }
 0x1ab   : > { %v1669_v4 = vpop.eup %1668  ;;  %1103 = vadd.xlane.f32.xlu0 %v1059_v14 }
 0x1ac   : > { %v1013_v46 = vmul.f32 %v1669_v4, %v981_v43  ;;  %v1061_v7 = vmul.f32 %v2676_v19, %v2676_v19 }
 0x1ae   : > { %v1671_v15 = vpop.eup %1670  ;;  %1105 = vadd.xlane.f32.xlu1 %v1060_v2  ;;  %v2691_v3 = vadd.f32 %v1741_v13, %v1013_v46 }
 0x1af   : > { %v998_v17 = vmul.f32 %v1671_v15, %v966_v12  ;;  %1135 = vadd.xlane.f32.xlu0 %v1075_v20 }
 0x1b0   : > { %v1673_v6 = vpop.eup %1672  ;;  %v1077_v50 = vmul.f32 %v2691_v3, %v2691_v3 }
 0x1b1   : > { %v2688_v18 = vadd.f32 %v998_v17, %v2914_v35  ;;  %v1014_v59 = vmul.f32 %v1673_v6, %v982_v23 }
 0x1b2   : > { %1137 = vadd.xlane.f32.xlu1 %v1076_v49 }
 0x1b3   : > { %v1062_v10 = vmul.f32 %v2688_v18, %v2688_v18  ;;  %1107 = vadd.xlane.f32.xlu0 %v1061_v7  ;;  %v2696_v29 = vadd.f32 %v1742_v16, %v1014_v59 }
 0x1b5   : > { %v1078_v35 = vmul.f32 %v2696_v29, %v2696_v29 }
 0x1b6   : > { %1109 = vadd.xlane.f32.xlu1 %v1062_v10 }
 0x1b7   : > { %1139 = vadd.xlane.f32.xlu0 %v1077_v50 }
 0x1ba   : > { %1141 = vadd.xlane.f32.xlu1 %v1078_v35 }
 0x1fe   : > { %v1080_v31 = vpop.xlane.xlu0 %1079 }
 0x1ff   : > { %v1143_v42 = vmax.f32 %v1080_v31, 1e-24 }
 0x201   : > { %1674 = vrsqrt.f32 %v1143_v42 }
 0x202   : > { %v1112_v40 = vpop.xlane.xlu0 %1111 }
 0x203   : > { %v1159_v22 = vmax.f32 %v1112_v40, 1e-24  ;;  %v1082_v61 = vpop.xlane.xlu1 %1081 }
 0x204   : > { %v1144_v27 = vmax.f32 %v1082_v61, 1e-24 }
 0x205   : > { %1676 = vrsqrt.f32 %v1159_v22 }
 0x206   : > { %1678 = vrsqrt.f32 %v1144_v27 }
 0x207   : > { %v1114_v14 = vpop.xlane.xlu1 %1113 }
 0x208   : > { %v1160_v25 = vmax.f32 %v1114_v14, 1e-24  ;;  %v1084_v5 = vpop.xlane.xlu0 %1083 }
 0x209   : > { %v1145_v32 = vmax.f32 %v1084_v5, 1e-24 }
 0x20a   : > { %1680 = vrsqrt.f32 %v1160_v25 }
 0x20b   : > { %1682 = vrsqrt.f32 %v1145_v32 }
 0x20c   : > { %v1086_v36 = vpop.xlane.xlu1 %1085 }
 0x20d   : > { %v1116_v1 = vpop.xlane.xlu0 %1115  ;;  %v1146_v2 = vmax.f32 %v1086_v36, 1e-24 }
 0x20e   : > { %v1675_v30 = vpop.eup %1674  ;;  %v1161_v4 = vmax.f32 %v1116_v1, 1e-24 }
 0x20f   : > { %v1207_v43 = vmul.f32 %v1675_v30, %v2433_v45  ;;  %v2917_v45 = vld [vmem:[#allocation32_spill] sm:$0xff] }
 0x210   : > { %1684 = vrsqrt.f32 %v1161_v4 }
 0x211   : > { %1239 = vst [vmem:[%s2704_s29] sm:$0xff] %v1207_v43  ;;  %1686 = vrsqrt.f32 %v1146_v2 }
 0x212   : > { %v1118_v34 = vpop.xlane.xlu1 %1117  ;;  %v1677_v12 = vpop.eup %1676 }
 0x213   : > { %v1162_v38 = vmax.f32 %v1118_v34, 1e-24  ;;  %v1088_v15 = vpop.xlane.xlu0 %1087  ;;  %v1223_v46 = vmul.f32 %v1677_v12, %v2450_v39  ;;  %v1679_v17 = vpop.eup %1678 }
 0x214   : > { %v1147_v20 = vmax.f32 %v1088_v15, 1e-24  ;;  %v1208_v23 = vmul.f32 %v1679_v17, %v2917_v45 }
 0x215   : > { %1688 = vrsqrt.f32 %v1162_v38  ;;  %1255 = vst [vmem:[%s2704_s29 + $0x80] sm:$0xff] %v1223_v46 }
 0x216   : > { %1690 = vrsqrt.f32 %v1147_v20  ;;  %1240 = vst [vmem:[%s2704_s29 + $0x8] sm:$0xff] %v1208_v23 }
 0x217   : > { %v1120_v7 = vpop.xlane.xlu0 %1119  ;;  %v1090_v6 = vpop.xlane.xlu1 %1089 }
 0x218   : > { %v1163_v49 = vmax.f32 %v1120_v7, 1e-24  ;;  %v1148_v59 = vmax.f32 %v1090_v6, 1e-24  ;;  %v1681_v13 = vpop.eup %1680 }
 0x219   : > { %v1683_v10 = vpop.eup %1682  ;;  %v1224_v16 = vmul.f32 %v1681_v13, %v2485_v56 }
 0x21a   : > { %1692 = vrsqrt.f32 %v1163_v49  ;;  %v1209_v39 = vmul.f32 %v1683_v10, %v2493_v63 }
 0x21b   : > { %1694 = vrsqrt.f32 %v1148_v59  ;;  %v1122_v50 = vpop.xlane.xlu1 %1121  ;;  %1256 = vst [vmem:[%s2704_s29 + $0x88] sm:$0xff] %v1224_v16  ;;  %v1092_v31 = vpop.xlane.xlu0 %1091 }
 0x21c   : > { %v1164_v35 = vmax.f32 %v1122_v50, 1e-24  ;;  %1241 = vst [vmem:[%s2704_s29 + $0x10] sm:$0xff] %v1209_v39  ;;  %v1149_v42 = vmax.f32 %v1092_v31, 1e-24 }
 0x21d   : > { %v1685_v40 = vpop.eup %1684 }
 0x21e   : > { %1696 = vrsqrt.f32 %v1164_v35  ;;  %v1687_v22 = vpop.eup %1686  ;;  %v1225_v61 = vmul.f32 %v1685_v40, %v2514_v57 }
 0x21f   : > { %1698 = vrsqrt.f32 %v1149_v42  ;;  %v1094_v27 = vpop.xlane.xlu1 %1093  ;;  %v1210_v56 = vmul.f32 %v1687_v22, %v2519_v48 }
 0x220   : > { %v1124_v63 = vpop.xlane.xlu0 %1123  ;;  %v1150_v14 = vmax.f32 %v1094_v27, 1e-24  ;;  %1257 = vst [vmem:[%s2704_s29 + $0x90] sm:$0xff] %v1225_v61 }
 0x221   : > { %v1165_v25 = vmax.f32 %v1124_v63, 1e-24  ;;  %1242 = vst [vmem:[%s2704_s29 + $0x18] sm:$0xff] %v1210_v56 }
 0x222   : > { %v1689_v5 = vpop.eup %1688  ;;  %1700 = vrsqrt.f32 %v1150_v14 }
 0x223   : > { %v1691_v32 = vpop.eup %1690  ;;  %v1226_v1 = vmul.f32 %v1689_v5, %v2538_v26  ;;  %1702 = vrsqrt.f32 %v1165_v25  ;;  %v1126_v36 = vpop.xlane.xlu1 %1125 }
 0x224   : > { %v1211_v57 = vmul.f32 %v1691_v32, %v2541_v44  ;;  %v1166_v30 = vmax.f32 %v1126_v36, 1e-24  ;;  %v1096_v4 = vpop.xlane.xlu0 %1095 }
 0x225   : > { %1258 = vst [vmem:[%s2704_s29 + $0x98] sm:$0xff] %v1226_v1  ;;  %v1151_v48 = vmax.f32 %v1096_v4, 1e-24 }
 0x226   : > { %1243 = vst [vmem:[%s2704_s29 + $0x20] sm:$0xff] %v1211_v57  ;;  %1704 = vrsqrt.f32 %v1166_v30 }
 0x227   : > { %v1693_v2 = vpop.eup %1692  ;;  %1706 = vrsqrt.f32 %v1151_v48  ;;  %v1098_v43 = vpop.xlane.xlu1 %1097 }
 0x228   : > { %v1695_v34 = vpop.eup %1694  ;;  %v1227_v12 = vmul.f32 %v1693_v2, %v2559_v11  ;;  %v1128_v38 = vpop.xlane.xlu0 %1127  ;;  %v1152_v26 = vmax.f32 %v1098_v43, 1e-24 }
 0x229   : > { %v1212_v15 = vmul.f32 %v1695_v34, %v2562_v51  ;;  %v1167_v44 = vmax.f32 %v1128_v38, 1e-24 }
 0x22a   : > { %1259 = vst [vmem:[%s2704_s29 + $0xa0] sm:$0xff] %v1227_v12  ;;  %1708 = vrsqrt.f32 %v1152_v26 }
 0x22b   : > { %v1697_v46 = vpop.eup %1696  ;;  %1244 = vst [vmem:[%s2704_s29 + $0x28] sm:$0xff] %v1212_v15  ;;  %1710 = vrsqrt.f32 %v1167_v44  ;;  %v1130_v20 = vpop.xlane.xlu1 %1129 }
 0x22c   : > { %v1699_v17 = vpop.eup %1698  ;;  %v1228_v45 = vmul.f32 %v1697_v46, %v2571_v9  ;;  %v1168_v23 = vmax.f32 %v1130_v20, 1e-24  ;;  %v1100_v7 = vpop.xlane.xlu0 %1099 }
 0x22d   : > { %v1213_v11 = vmul.f32 %v1699_v17, %v2574_v24  ;;  %v1153_v6 = vmax.f32 %v1100_v7, 1e-24 }
 0x22e   : > { %1260 = vst [vmem:[%s2704_s29 + $0xa8] sm:$0xff] %v1228_v45  ;;  %1712 = vrsqrt.f32 %v1168_v23 }
 0x22f   : > { %v1701_v51 = vpop.eup %1700  ;;  %1245 = vst [vmem:[%s2704_s29 + $0x30] sm:$0xff] %v1213_v11  ;;  %1714 = vrsqrt.f32 %v1153_v6  ;;  %v1102_v49 = vpop.xlane.xlu1 %1101 }
 0x230   : > { %v1703_v59 = vpop.eup %1702  ;;  %v1214_v13 = vmul.f32 %v1701_v51, %v2588_v60  ;;  %v1132_v10 = vpop.xlane.xlu0 %1131  ;;  %v1154_v16 = vmax.f32 %v1102_v49, 1e-24 }
 0x231   : > { %v1229_v9 = vmul.f32 %v1703_v59, %v2585_v41  ;;  %v1169_v39 = vmax.f32 %v1132_v10, 1e-24 }
 0x232   : > { %1246 = vst [vmem:[%s2704_s29 + $0x38] sm:$0xff] %v1214_v13  ;;  %1716 = vrsqrt.f32 %v1154_v16 }
 0x233   : > { %v1705_v24 = vpop.eup %1704  ;;  %1261 = vst [vmem:[%s2704_s29 + $0xb0] sm:$0xff] %v1229_v9  ;;  %1718 = vrsqrt.f32 %v1169_v39  ;;  %v1134_v50 = vpop.xlane.xlu1 %1133 }
 0x234   : > { %v1707_v35 = vpop.eup %1706  ;;  %v1230_v31 = vmul.f32 %v1705_v24, %v2598_v8  ;;  %v1170_v42 = vmax.f32 %v1134_v50, 1e-24  ;;  %v1104_v40 = vpop.xlane.xlu0 %1103 }
 0x235   : > { %v1215_v60 = vmul.f32 %v1707_v35, %v2593_v52  ;;  %v1155_v22 = vmax.f32 %v1104_v40, 1e-24 }
 0x236   : > { %1262 = vst [vmem:[%s2704_s29 + $0xb8] sm:$0xff] %v1230_v31  ;;  %1720 = vrsqrt.f32 %v1170_v42 }
 0x237   : > { %v1709_v41 = vpop.eup %1708  ;;  %1247 = vst [vmem:[%s2704_s29 + $0x40] sm:$0xff] %v1215_v60  ;;  %1722 = vrsqrt.f32 %v1155_v22  ;;  %v1106_v61 = vpop.xlane.xlu1 %1105 }
 0x238   : > { %v1711_v27 = vpop.eup %1710  ;;  %v1216_v56 = vmul.f32 %v1709_v41, %v2606_v54  ;;  %v1136_v63 = vpop.xlane.xlu0 %1135  ;;  %v1156_v14 = vmax.f32 %v1106_v61, 1e-24 }
 0x239   : > { %v1231_v8 = vmul.f32 %v1711_v27, %v2617_v28  ;;  %v1171_v25 = vmax.f32 %v1136_v63, 1e-24 }
 0x23a   : > { %1248 = vst [vmem:[%s2704_s29 + $0x48] sm:$0xff] %v1216_v56  ;;  %1724 = vrsqrt.f32 %v1156_v14 }
 0x23b   : > { %v1713_v52 = vpop.eup %1712  ;;  %1263 = vst [vmem:[%s2704_s29 + $0xc0] sm:$0xff] %v1231_v8  ;;  %1726 = vrsqrt.f32 %v1171_v25  ;;  %v1138_v5 = vpop.xlane.xlu1 %1137 }
 0x23c   : > { %v1715_v32 = vpop.eup %1714  ;;  %v1232_v1 = vmul.f32 %v1713_v52, %v2627_v47  ;;  %v1172_v36 = vmax.f32 %v1138_v5, 1e-24  ;;  %v1108_v57 = vpop.xlane.xlu0 %1107 }
 0x23d   : > { %v1217_v54 = vmul.f32 %v1715_v32, %v2624_v33  ;;  %v1157_v30 = vmax.f32 %v1108_v57, 1e-24 }
 0x23e   : > { %1264 = vst [vmem:[%s2704_s29 + $0xc8] sm:$0xff] %v1232_v1  ;;  %1728 = vrsqrt.f32 %v1172_v36 }
 0x23f   : > { %v1717_v28 = vpop.eup %1716  ;;  %1249 = vst [vmem:[%s2704_s29 + $0x50] sm:$0xff] %v1217_v54  ;;  %1730 = vrsqrt.f32 %v1157_v30  ;;  %v1110_v4 = vpop.xlane.xlu1 %1109 }
 0x240   : > { %v1719_v48 = vpop.eup %1718  ;;  %v1218_v2 = vmul.f32 %v1717_v28, %v2634_v21  ;;  %v1140_v43 = vpop.xlane.xlu0 %1139  ;;  %v1158_v34 = vmax.f32 %v1110_v4, 1e-24 }
 0x241   : > { %v1233_v47 = vmul.f32 %v1719_v48, %v2644_v58  ;;  %v1173_v12 = vmax.f32 %v1140_v43, 1e-24 }
 0x242   : > { %1250 = vst [vmem:[%s2704_s29 + $0x58] sm:$0xff] %v1218_v2  ;;  %1732 = vrsqrt.f32 %v1158_v34 }
 0x243   : > { %v1721_v33 = vpop.eup %1720  ;;  %1265 = vst [vmem:[%s2704_s29 + $0xd0] sm:$0xff] %v1233_v47  ;;  %1734 = vrsqrt.f32 %v1173_v12  ;;  %v1142_v38 = vpop.xlane.xlu1 %1141 }
 0x244   : > { %v1723_v26 = vpop.eup %1722  ;;  %v1234_v15 = vmul.f32 %v1721_v33, %v2655_v62  ;;  %v1174_v44 = vmax.f32 %v1142_v38, 1e-24 }
 0x245   : > { %v1219_v21 = vmul.f32 %v1723_v26, %v2652_v53 }
 0x246   : > { %1266 = vst [vmem:[%s2704_s29 + $0xd8] sm:$0xff] %v1234_v15  ;;  %1736 = vrsqrt.f32 %v1174_v44 }
 0x247   : > { %v1725_v58 = vpop.eup %1724  ;;  %1251 = vst [vmem:[%s2704_s29 + $0x60] sm:$0xff] %v1219_v21 }
 0x248   : > { %v1727_v46 = vpop.eup %1726  ;;  %v1220_v20 = vmul.f32 %v1725_v58, %v2662_v37 }
 0x249   : > { %v1235_v17 = vmul.f32 %v1727_v46, %v2671_v0 }
 0x24a   : > { %1252 = vst [vmem:[%s2704_s29 + $0x68] sm:$0xff] %v1220_v20 }
 0x24b   : > { %v1729_v62 = vpop.eup %1728  ;;  %1267 = vst [vmem:[%s2704_s29 + $0xe0] sm:$0xff] %v1235_v17 }
 0x24c   : > { %v1731_v45 = vpop.eup %1730  ;;  %v1236_v53 = vmul.f32 %v1729_v62, %v2679_v55 }
 0x24d   : > { %v1221_v23 = vmul.f32 %v1731_v45, %v2676_v19 }
 0x24e   : > { %1268 = vst [vmem:[%s2704_s29 + $0xe8] sm:$0xff] %v1236_v53 }
 0x24f   : > { %v1733_v7 = vpop.eup %1732  ;;  %1253 = vst [vmem:[%s2704_s29 + $0x70] sm:$0xff] %v1221_v23 }
 0x250   : > { %v1735_v11 = vpop.eup %1734  ;;  %v1222_v37 = vmul.f32 %v1733_v7, %v2688_v18 }
 0x251   : > { %v1237_v0 = vmul.f32 %v1735_v11, %v2691_v3 }
 0x252   : > { %1254 = vst [vmem:[%s2704_s29 + $0x78] sm:$0xff] %v1222_v37 }
 0x253   : > { %v1737_v6 = vpop.eup %1736  ;;  %1269 = vst [vmem:[%s2704_s29 + $0xf0] sm:$0xff] %v1237_v0 }
 0x254   : > { %v1238_v19 = vmul.f32 %v1737_v6, %v2696_v29 }
 0x256   : > { %1270 = vst [vmem:[%s2704_s29 + $0xf8] sm:$0xff] %v1238_v19 }
 0x257   : > { %1810 = shalt.err (!%p1807_p0)
}
 0x258   : > { %s1811_s21 = scalar_lea.hbm %s2772_s8, 4096  ;;  %s1815_s4 = scalar_lea.hbm %s2822_s3, 8192 }
 0x259   : > { %p1812_p5 = scmp.ne.s32.totalorder %s2772_s8, %s1811_s21  ;;  %p1816_p4 = scmp.lt.s32.totalorder %s2772_s8, %s2822_s3 }
 0x25a   : > { %p1817_p6 = scmp.lt.s32.totalorder %s1815_s4, %s1811_s21 }
 0x25b   : > { %p1813_p2 = pnand %p1812_p5, %p2918_p11 }
 0x25c   : > { %p1818_p8 = por %p1817_p6, %p1816_p4 }
 0x25d   : > { %p1814_p1 = pneg %p1813_p2 }
 0x25f   : > { %p1819_p3 = pnand %p1818_p8, %p1814_p1 }
 0x261   : > { %1822 = shalt.err (!%p1819_p3)
}
 0x262   : > { %s1872_s28 = smov 128   ;;  %s1873_s29 = smov 8  }
 0x263   : > { %1491 = dma.vmem_to_hbm [thread:$0]  (%p2918_p11), %s2774_s22, 4096, %s2772_s8, %s1272_s16, %s1872_s28, %s1872_s28, %s1873_s29  }
 0x264 PF: > { %s1300_s17 = sand.u32 1, %s1853_s12   ;;  %p2919_p7 = scmp.ne.s32.totalorder %s2850_s19, 0 }
 0x265   : > { %p2920_p9 = scmp.ge.s32.totalorder %s1865_s15, 2  ;;  %s1301_s23 = scalar_lea.sflag [#allocation4], %s1300_s17 }
 0x267   : > { %p1502_p10 = pnand %p2920_p9, %p2919_p7 }
 0x269   : > { %p1503_p12 = pneg %p1502_p10 }
 0x26b   : > { %1848 = dma.done.wait (%p1503_p12), %s1301_s23, 4096  }
 0x26c   : > { %1850 = vsyncadd (%p1503_p12), %s1301_s23, 4294963200  ;;  %p17_p13 = scmp.ge.s32.totalorder %s1948_s24, 4   ;;  %s2921_s12 = smov %s1857_s13 }
 0x26d   : > { %s2922_s13 = smov %s1861_s14  ;;  %s2923_s14 = smov %s1968_s5 }
 0x26e   : > { %s2924_s15 = smov %s1948_s24  ;;  %19 = sbr.rel (!%p17_p13) target bundleno = 6 (0x6), region = 81 }
 0x273   :  { %1306 = vsyncpa [#allocation3], 1 }
 0x274   :  { %1308 = vsyncpa [#allocation3 + $0x1], 1 }
 0x275   :  { %1309 = vsyncpa [#allocation6], 1 }
 0x276   :  { %1310 = vsyncpa [#allocation4], 1 }
 0x277   :  { %1312 = vsyncpa [#allocation4 + $0x1], 1 }

</bundles_post_ra>
